<compile_context>
chip_gen: v7x
topology: tpu7x:2x2x1
jax: 0.10.0
libtpu: 0.0.40
codegen_flags: <defaults>
</compile_context>

<pallas_src>
import math
from functools import partial

import jax
import jax.numpy as jnp
from jax import lax
from jax.experimental import pallas as pl
from jax.experimental.pallas import tpu as pltpu


_SUB = 4  # sublane rows per coordinate: rows [0:4] = x, rows [4:8] = y (8 = one f32 tile height)


def _cdiv(a, b):
    return (a + b - 1) // b


def _round_up(a, m):
    return _cdiv(a, m) * m


# ----------------------------------------------------------------------------
# Pallas kernel: one (batch-tile, time-chunk) grid step of the RK4 integrator
# ----------------------------------------------------------------------------
def _circle_rk4_kernel(t_ref, radius_ref, xy0_ref, out_ref, state_ref):
    """Circle-ODE RK4, T-chunked, x/y jointly packed in one (8, LANES) tile.

    t_ref      : (T_pad,)             f32 SMEM -- time grid (pad rows repeat t[-1] -> dt=0)
    radius_ref : (1,)                 f32 SMEM -- learnable radius parameter
    xy0_ref    : (8, LANES)           f32 VMEM -- initial state, rows 0:4 = x, 4:8 = y
    out_ref    : (T_chunk, 8, LANES)  f32 VMEM -- trajectory rows for this chunk
    state_ref  : (8, LANES)           f32 VMEM -- running state, carried across T-chunks
    """
    tc = pl.program_id(1)
    t_chunk, n_rows, lanes = out_ref.shape
    sub = n_rows // 2

    # First time-chunk of each batch tile: load the initial condition.
    @pl.when(tc == 0)
    def _():
        state_ref[...] = xy0_ref[...]

    radius = radius_ref[0]
    row_ids = lax.broadcasted_iota(jnp.int32, (n_rows, lanes), 0)
    is_x_row = row_ids < sub
    signed_r = jnp.where(is_x_row, -radius, radius)   # hoisted: per-row (+-R) scale
    origin_d = jnp.where(is_x_row, 0.0, radius)       # atan2(0,0)=0 -> (dx,dy)=(0,R)

    def vector_field(xy):
        # dx = -R*sin(atan2(y,x)) = -R*y/r ;  dy = R*cos(atan2(y,x)) = R*x/r
        sq = xy * xy
        r2 = sq + pltpu.roll(sq, shift=sub, axis=0)      # x^2+y^2 in every row (XLU)
        pos = r2 > 0.0
        inv_r = jnp.where(pos, lax.rsqrt(r2), 0.0)       # EUP rsqrt, guarded at origin
        d = (signed_r * inv_r) * pltpu.roll(xy, shift=sub, axis=0)
        return jnp.where(pos, d, origin_d)

    def step(j, xy):
        r = tc * t_chunk + j                             # global trajectory row
        dt = t_ref[r] - t_ref[jnp.maximum(r - 1, 0)]     # 0.0 for row 0 and pad rows
        half = dt * 0.5
        k1 = vector_field(xy)
        k2 = vector_field(xy + half * k1)
        k3 = vector_field(xy + half * k2)
        k4 = vector_field(xy + dt * k3)
        xy_new = xy + (dt * (1.0 / 6.0)) * (k1 + 2.0 * (k2 + k3) + k4)
        out_ref[j] = xy_new                              # full (8, LANES) tile store
        return xy_new

    xy_final = lax.fori_loop(0, t_chunk, step, state_ref[...],
                             unroll=min(8, t_chunk))     # bounded unroll
    state_ref[...] = xy_final


# ----------------------------------------------------------------------------
# Wrapper: AnalyticalCircleODE.integrate -> trajectory of shape (B, T, 2)
# ----------------------------------------------------------------------------
@partial(jax.jit, static_argnames=("t_chunk", "lanes"))
def analytical_circle_trajectory(x_init, t_span, radius, *, t_chunk=None, lanes=None):
    B, F = x_init.shape
    assert F == 2, x_init.shape
    T = t_span.shape[0]

    # --- batch packing: (sublane, lane)-dense tiles of 4*LANES batch elems each
    if lanes is None:
        lanes = min(512, max(128, _round_up(_cdiv(B, _SUB), 128)))
    tile_batch = _SUB * lanes
    n_btiles = _cdiv(B, tile_batch)
    B_pad = n_btiles * tile_batch

    x_f32 = x_init.astype(jnp.float32)
    xpad = jnp.concatenate([x_f32[:, 0], jnp.ones((B_pad - B,), jnp.float32)])
    ypad = jnp.concatenate([x_f32[:, 1], jnp.zeros((B_pad - B,), jnp.float32)])
    xy0 = jnp.concatenate(
        [xpad.reshape(n_btiles, _SUB, lanes), ypad.reshape(n_btiles, _SUB, lanes)],
        axis=1)                                                       # (n_btiles, 8, lanes)

    # --- time chunking (bounded VMEM, pipelined writeback)
    if t_chunk is None:
        t_chunk = min(T, 128)
    n_tchunks = _cdiv(T, t_chunk)
    T_pad = n_tchunks * t_chunk
    t_f32 = t_span.astype(jnp.float32)
    if T_pad > T:
        t_f32 = jnp.concatenate(
            [t_f32, jnp.full((T_pad - T,), t_f32[-1], jnp.float32)])  # dt=0 on pad rows

    radius_arr = jnp.reshape(radius, (1,)).astype(jnp.float32)

    smem = pl.BlockSpec(memory_space=pltpu.MemorySpace.SMEM)

    out = pl.pallas_call(
        _circle_rk4_kernel,
        out_shape=jax.ShapeDtypeStruct((n_btiles, T_pad, 2 * _SUB, lanes), jnp.float32),
        grid_spec=pltpu.PrefetchScalarGridSpec(
            num_scalar_prefetch=0,
            grid=(n_btiles, n_tchunks),
            in_specs=[
                smem,                                                  # time grid
                smem,                                                  # radius
                pl.BlockSpec((None, 2 * _SUB, lanes), lambda bt, tc: (bt, 0, 0)),
            ],
            out_specs=pl.BlockSpec((None, t_chunk, 2 * _SUB, lanes),
                                   lambda bt, tc: (bt, tc, 0, 0)),
            scratch_shapes=[pltpu.VMEM((2 * _SUB, lanes), jnp.float32)],
        ),
        compiler_params=pltpu.CompilerParams(
            dimension_semantics=("parallel", "arbitrary")),
    )(t_f32, radius_arr, xy0)

    # --- unpack (n_btiles, T, 8, lanes) -> (B, T, 2)
    x_traj = jnp.transpose(out[:, :T, :_SUB, :], (1, 0, 2, 3)).reshape(T, B_pad)[:, :B]
    y_traj = jnp.transpose(out[:, :T, _SUB:, :], (1, 0, 2, 3)).reshape(T, B_pad)[:, :B]
    traj = jnp.stack([x_traj, y_traj], axis=-1)        # (T, B, 2)
    return jnp.swapaxes(traj, 0, 1)                    # (B, T, 2)  (.swapdims(0,1))


def analytical_circle_ode_forward(x_init, t=None, T=None, *, radius, dt=0.1):
    """Mirrors AnalyticalCircleODE.integrate(): either a 2-D t (t[0] used) or T+dt."""
    if t is not None:
        assert t.ndim == 2 and T is None
        t_span = t[0]
    else:
        assert T is not None
        # NOTE: literal PyTorch formula (spacing (T+1)*dt/T, not dt) kept for parity.
        t_span = jnp.linspace(0.0, (T + 1) * dt, T + 1)
    return analytical_circle_trajectory(x_init, t_span, radius)


# ----------------------------------------------------------------------------
# Pure-JAX reference (exact PyTorch math: atan2 + sin/cos) for correctness
# ----------------------------------------------------------------------------
def _circle_vf_ref(x, radius):
    x_, y_ = x[..., 0:1], x[..., 1:2]
    theta = jnp.arctan2(y_, x_)
    return jnp.concatenate([-radius * jnp.sin(theta), radius * jnp.cos(theta)], axis=-1)


def forward_ref(x_init, t_span, radius):
    x0 = x_init.astype(jnp.float32)

    def step(x, ts):
        t0, t1 = ts
        dt = t1 - t0
        k1 = _circle_vf_ref(x, radius)
        k2 = _circle_vf_ref(x + dt / 2 * k1, radius)
        k3 = _circle_vf_ref(x + dt / 2 * k2, radius)
        k4 = _circle_vf_ref(x + dt * k3, radius)
        xn = x + dt / 6 * (k1 + 2 * k2 + 2 * k3 + k4)
        return xn, xn

    _, ys = lax.scan(step, x0, (t_span[:-1], t_span[1:]))
    return jnp.swapaxes(jnp.concatenate([x0[None], ys], axis=0), 0, 1)   # (B, T, 2)


# ----------------------------------------------------------------------------
if __name__ == "__main__":
    data_radius, data_dt = 1.5, 0.1
    radius = jnp.array([data_radius], jnp.float32)        # nn.Parameter([data_radius])
    key = jax.random.PRNGKey(0)
    k0, k1, k2 = jax.random.split(key, 3)

    # --- primary config: B=4, T=8 (tiny shapes matching the module's usage) ---
    B, T = 4, 8
    angles = jax.random.uniform(k0, (B, 1), jnp.float32, 0.0, 2.0 * math.pi)
    jitter = 1.0 + 0.1 * jax.random.normal(k1, (B, 1), jnp.float32)
    x_init = data_radius * jitter * jnp.concatenate(
        [jnp.cos(angles), jnp.sin(angles)], axis=-1)                     # (B, 2)
    t = jnp.linspace(0.0, (T - 1) * data_dt, T, dtype=jnp.float32)[None, :]  # (1, T)

    traj = analytical_circle_ode_forward(x_init, t=t, radius=radius)
    traj = jax.block_until_ready(traj)
    assert traj.shape == (B, T, 2), traj.shape
    traj_ref = forward_ref(x_init, t[0], radius)
    assert jnp.allclose(traj[:, 0], x_init, atol=1e-6)                   # initial condition
    err = float(jnp.max(jnp.abs(traj - traj_ref)))
    assert jnp.allclose(traj, traj_ref, rtol=1e-4, atol=1e-4), err

    # --- secondary config: exercises multiple batch tiles, T-chunked grid with a
    #     padded tail chunk, pad lanes, and the exact-origin special case. ---
    B2, T2 = 700, 5
    x_init2 = jax.random.normal(k2, (B2, 2), jnp.float32)
    x_init2 = x_init2.at[0].set(jnp.zeros((2,), jnp.float32))            # point at the origin
    t2 = jnp.linspace(0.0, (T2 - 1) * data_dt, T2, dtype=jnp.float32)
    traj2 = analytical_circle_trajectory(x_init2, t2, radius, t_chunk=2, lanes=128)
    traj2 = jax.block_until_ready(traj2)
    assert traj2.shape == (B2, T2, 2), traj2.shape
    traj2_ref = forward_ref(x_init2, t2, radius)
    assert jnp.allclose(traj2[:, 0], x_init2, atol=1e-6)
    err2 = float(jnp.max(jnp.abs(traj2 - traj2_ref)))
    assert jnp.allclose(traj2, traj2_ref, rtol=1e-4, atol=1e-4), err2

    print("KERNEL_OK")
</pallas_src>

<mosaic_0001>
module attributes {stable_mosaic.version = 11 : i64} {
  func.func @_circle_rk4_kernel(%arg0: i32, %arg1: i32, %arg2: memref<8xf32, #tpu.memory_space<smem>>, %arg3: memref<1xf32, #tpu.memory_space<smem>>, %arg4: memref<1x8x128xf32, #tpu.memory_space<vmem>>, %arg5: memref<1x8x8x128xf32, #tpu.memory_space<vmem>>, %arg6: memref<8x128xf32, #tpu.memory_space<vmem>>) attributes {dimension_semantics = [#tpu.dimension_semantics<parallel>, #tpu.dimension_semantics<arbitrary>], iteration_bounds = array<i64: 1, 1>, scalar_prefetch = 0 : i64, scratch_operands = 1 : i64, tpu.core_type = #tpu.core_type<tc>, window_params = [{transform_indices = @transform_0, window_bounds = array<i64: 8>}, {transform_indices = @transform_1, window_bounds = array<i64: 1>}, {transform_indices = @transform_2, window_bounds = array<i64: 1, 8, 128>}, {transform_indices = @transform_3, window_bounds = array<i64: 1, 8, 8, 128>}]} {
    %c0_i32 = arith.constant 0 : i32
    %0 = arith.cmpi eq, %arg1, %c0_i32 : i32
    %1 = arith.extui %0 : i1 to i32
    %c0_i32_0 = arith.constant 0 : i32
    %2 = arith.cmpi ne, %1, %c0_i32_0 : i32
    scf.if %2 {
      %c0_208 = arith.constant 0 : index
      %c0_209 = arith.constant 0 : index
      %c0_210 = arith.constant 0 : index
      %656 = vector.load %arg4[%c0_208, %c0_209, %c0_210] : memref<1x8x128xf32, #tpu.memory_space<vmem>>, vector<1x8x128xf32>
      %657 = vector.shape_cast %656 : vector<1x8x128xf32> to vector<8x128xf32>
      %c0_211 = arith.constant 0 : index
      %c0_212 = arith.constant 0 : index
      %658 = vector.load %arg6[%c0_211, %c0_212] : memref<8x128xf32, #tpu.memory_space<vmem>>, vector<8x128xf32>
      tpu.vector_store %arg6[%c0_211, %c0_212], %657 {strides = array<i32>} : memref<8x128xf32, #tpu.memory_space<vmem>>, vector<8x128xf32>,
    } else {
    }
    %c0 = arith.constant 0 : index
    %3 = memref.load %arg3[%c0] : memref<1xf32, #tpu.memory_space<smem>>
    %4 = tpu.iota {dimensions = array<i32: 0>} : vector<8x128xi32>
    %c4_i32 = arith.constant 4 : i32
    %5 = vector.broadcast %c4_i32 : i32 to vector<8x128xi32>
    %6 = arith.cmpi slt, %4, %5 : vector<8x128xi32>
    %cst = arith.constant 0.000000e+00 : f32
    %7 = arith.subf %cst, %3 : f32
    %8 = vector.broadcast %7 : f32 to vector<8x128xf32>
    %9 = vector.broadcast %3 : f32 to vector<8x128xf32>
    %10 = arith.select %6, %8, %9 : vector<8x128xi1>, vector<8x128xf32>
    %cst_1 = arith.constant 0.000000e+00 : f32
    %11 = vector.broadcast %cst_1 : f32 to vector<8x128xf32>
    %12 = vector.broadcast %3 : f32 to vector<8x128xf32>
    %13 = arith.select %6, %11, %12 : vector<8x128xi1>, vector<8x128xf32>
    %c0_2 = arith.constant 0 : index
    %c0_3 = arith.constant 0 : index
    %14 = vector.load %arg6[%c0_2, %c0_3] : memref<8x128xf32, #tpu.memory_space<vmem>>, vector<8x128xf32>
    %c0_i32_4 = arith.constant 0 : i32
    %c8_i32 = arith.constant 8 : i32
    %15 = arith.muli %arg1, %c8_i32 : i32
    %16 = arith.addi %15, %c0_i32_4 : i32
    %17 = arith.index_cast %16 : i32 to index
    %18 = memref.load %arg2[%17] : memref<8xf32, #tpu.memory_space<smem>>
    %c1_i32 = arith.constant 1 : i32
    %19 = arith.subi %16, %c1_i32 : i32
    %c0_i32_5 = arith.constant 0 : i32
    %20 = arith.maxsi %19, %c0_i32_5 : i32
    %21 = arith.index_cast %20 : i32 to index
    %22 = memref.load %arg2[%21] : memref<8xf32, #tpu.memory_space<smem>>
    %23 = arith.subf %18, %22 : f32
    %cst_6 = arith.constant 5.000000e-01 : f32
    %24 = arith.mulf %23, %cst_6 : f32
    %25 = arith.mulf %14, %14 : vector<8x128xf32>
    %c4_i32_7 = arith.constant 4 : i32
    %26 = tpu.dynamic_rotate %25 by %c4_i32_7 dim 0 : vector<8x128xf32>, i32 -> vector<8x128xf32>
    %27 = arith.addf %25, %26 : vector<8x128xf32>
    %cst_8 = arith.constant 0.000000e+00 : f32
    %28 = vector.broadcast %cst_8 : f32 to vector<8x128xf32>
    %29 = arith.cmpf ogt, %27, %28 : vector<8x128xf32>
    %30 = math.rsqrt %27 : vector<8x128xf32>
    %cst_9 = arith.constant 0.000000e+00 : f32
    %31 = vector.broadcast %cst_9 : f32 to vector<8x128xf32>
    %32 = arith.select %29, %30, %31 : vector<8x128xi1>, vector<8x128xf32>
    %33 = arith.mulf %10, %32 : vector<8x128xf32>
    %c4_i32_10 = arith.constant 4 : i32
    %34 = tpu.dynamic_rotate %14 by %c4_i32_10 dim 0 : vector<8x128xf32>, i32 -> vector<8x128xf32>
    %35 = arith.mulf %33, %34 : vector<8x128xf32>
    %36 = arith.select %29, %35, %13 : vector<8x128xi1>, vector<8x128xf32>
    %37 = vector.broadcast %24 : f32 to vector<8x128xf32>
    %38 = arith.mulf %37, %36 : vector<8x128xf32>
    %39 = arith.addf %14, %38 : vector<8x128xf32>
    %40 = arith.mulf %39, %39 : vector<8x128xf32>
    %c4_i32_11 = arith.constant 4 : i32
    %41 = tpu.dynamic_rotate %40 by %c4_i32_11 dim 0 : vector<8x128xf32>, i32 -> vector<8x128xf32>
    %42 = arith.addf %40, %41 : vector<8x128xf32>
    %cst_12 = arith.constant 0.000000e+00 : f32
    %43 = vector.broadcast %cst_12 : f32 to vector<8x128xf32>
    %44 = arith.cmpf ogt, %42, %43 : vector<8x128xf32>
    %45 = math.rsqrt %42 : vector<8x128xf32>
    %cst_13 = arith.constant 0.000000e+00 : f32
    %46 = vector.broadcast %cst_13 : f32 to vector<8x128xf32>
    %47 = arith.select %44, %45, %46 : vector<8x128xi1>, vector<8x128xf32>
    %48 = arith.mulf %10, %47 : vector<8x128xf32>
    %c4_i32_14 = arith.constant 4 : i32
    %49 = tpu.dynamic_rotate %39 by %c4_i32_14 dim 0 : vector<8x128xf32>, i32 -> vector<8x128xf32>
    %50 = arith.mulf %48, %49 : vector<8x128xf32>
    %51 = arith.select %44, %50, %13 : vector<8x128xi1>, vector<8x128xf32>
    %52 = vector.broadcast %24 : f32 to vector<8x128xf32>
    %53 = arith.mulf %52, %51 : vector<8x128xf32>
    %54 = arith.addf %14, %53 : vector<8x128xf32>
    %55 = arith.mulf %54, %54 : vector<8x128xf32>
    %c4_i32_15 = arith.constant 4 : i32
    %56 = tpu.dynamic_rotate %55 by %c4_i32_15 dim 0 : vector<8x128xf32>, i32 -> vector<8x128xf32>
    %57 = arith.addf %55, %56 : vector<8x128xf32>
    %cst_16 = arith.constant 0.000000e+00 : f32
    %58 = vector.broadcast %cst_16 : f32 to vector<8x128xf32>
    %59 = arith.cmpf ogt, %57, %58 : vector<8x128xf32>
    %60 = math.rsqrt %57 : vector<8x128xf32>
    %cst_17 = arith.constant 0.000000e+00 : f32
    %61 = vector.broadcast %cst_17 : f32 to vector<8x128xf32>
    %62 = arith.select %59, %60, %61 : vector<8x128xi1>, vector<8x128xf32>
    %63 = arith.mulf %10, %62 : vector<8x128xf32>
    %c4_i32_18 = arith.constant 4 : i32
    %64 = tpu.dynamic_rotate %54 by %c4_i32_18 dim 0 : vector<8x128xf32>, i32 -> vector<8x128xf32>
    %65 = arith.mulf %63, %64 : vector<8x128xf32>
    %66 = arith.select %59, %65, %13 : vector<8x128xi1>, vector<8x128xf32>
    %67 = vector.broadcast %23 : f32 to vector<8x128xf32>
    %68 = arith.mulf %67, %66 : vector<8x128xf32>
    %69 = arith.addf %14, %68 : vector<8x128xf32>
    %70 = arith.mulf %69, %69 : vector<8x128xf32>
    %c4_i32_19 = arith.constant 4 : i32
    %71 = tpu.dynamic_rotate %70 by %c4_i32_19 dim 0 : vector<8x128xf32>, i32 -> vector<8x128xf32>
    %72 = arith.addf %70, %71 : vector<8x128xf32>
    %cst_20 = arith.constant 0.000000e+00 : f32
    %73 = vector.broadcast %cst_20 : f32 to vector<8x128xf32>
    %74 = arith.cmpf ogt, %72, %73 : vector<8x128xf32>
    %75 = math.rsqrt %72 : vector<8x128xf32>
    %cst_21 = arith.constant 0.000000e+00 : f32
    %76 = vector.broadcast %cst_21 : f32 to vector<8x128xf32>
    %77 = arith.select %74, %75, %76 : vector<8x128xi1>, vector<8x128xf32>
    %78 = arith.mulf %10, %77 : vector<8x128xf32>
    %c4_i32_22 = arith.constant 4 : i32
    %79 = tpu.dynamic_rotate %69 by %c4_i32_22 dim 0 : vector<8x128xf32>, i32 -> vector<8x128xf32>
    %80 = arith.mulf %78, %79 : vector<8x128xf32>
    %81 = arith.select %74, %80, %13 : vector<8x128xi1>, vector<8x128xf32>
    %cst_23 = arith.constant 0.166666672 : f32
    %82 = arith.mulf %23, %cst_23 : f32
    %83 = arith.addf %51, %66 : vector<8x128xf32>
    %cst_24 = arith.constant 2.000000e+00 : f32
    %84 = vector.broadcast %cst_24 : f32 to vector<8x128xf32>
    %85 = arith.mulf %84, %83 : vector<8x128xf32>
    %86 = arith.addf %36, %85 : vector<8x128xf32>
    %87 = arith.addf %86, %81 : vector<8x128xf32>
    %88 = vector.broadcast %82 : f32 to vector<8x128xf32>
    %89 = arith.mulf %88, %87 : vector<8x128xf32>
    %90 = arith.addf %14, %89 : vector<8x128xf32>
    %c0_25 = arith.constant 0 : index
    %91 = arith.index_cast %c0_i32_4 : i32 to index
    %c0_26 = arith.constant 0 : index
    %c0_27 = arith.constant 0 : index
    %92 = vector.load %arg5[%c0_25, %91, %c0_26, %c0_27] : memref<1x8x8x128xf32, #tpu.memory_space<vmem>>, vector<1x1x8x128xf32>
    %93 = vector.shape_cast %92 : vector<1x1x8x128xf32> to vector<8x128xf32>
    %94 = vector.shape_cast %90 : vector<8x128xf32> to vector<1x1x8x128xf32>
    tpu.vector_store %arg5[%c0_25, %91, %c0_26, %c0_27], %94 {strides = array<i32>} : memref<1x8x8x128xf32, #tpu.memory_space<vmem>>, vector<1x1x8x128xf32>,
    %c1_i32_28 = arith.constant 1 : i32
    %c8_i32_29 = arith.constant 8 : i32
    %95 = arith.muli %arg1, %c8_i32_29 : i32
    %96 = arith.addi %95, %c1_i32_28 : i32
    %97 = arith.index_cast %96 : i32 to index
    %98 = memref.load %arg2[%97] : memref<8xf32, #tpu.memory_space<smem>>
    %c1_i32_30 = arith.constant 1 : i32
    %99 = arith.subi %96, %c1_i32_30 : i32
    %c0_i32_31 = arith.constant 0 : i32
    %100 = arith.maxsi %99, %c0_i32_31 : i32
    %101 = arith.index_cast %100 : i32 to index
    %102 = memref.load %arg2[%101] : memref<8xf32, #tpu.memory_space<smem>>
    %103 = arith.subf %98, %102 : f32
    %cst_32 = arith.constant 5.000000e-01 : f32
    %104 = arith.mulf %103, %cst_32 : f32
    %105 = arith.mulf %90, %90 : vector<8x128xf32>
    %c4_i32_33 = arith.constant 4 : i32
    %106 = tpu.dynamic_rotate %105 by %c4_i32_33 dim 0 : vector<8x128xf32>, i32 -> vector<8x128xf32>
    %107 = arith.addf %105, %106 : vector<8x128xf32>
    %cst_34 = arith.constant 0.000000e+00 : f32
    %108 = vector.broadcast %cst_34 : f32 to vector<8x128xf32>
    %109 = arith.cmpf ogt, %107, %108 : vector<8x128xf32>
    %110 = math.rsqrt %107 : vector<8x128xf32>
    %cst_35 = arith.constant 0.000000e+00 : f32
    %111 = vector.broadcast %cst_35 : f32 to vector<8x128xf32>
    %112 = arith.select %109, %110, %111 : vector<8x128xi1>, vector<8x128xf32>
    %113 = arith.mulf %10, %112 : vector<8x128xf32>
    %c4_i32_36 = arith.constant 4 : i32
    %114 = tpu.dynamic_rotate %90 by %c4_i32_36 dim 0 : vector<8x128xf32>, i32 -> vector<8x128xf32>
    %115 = arith.mulf %113, %114 : vector<8x128xf32>
    %116 = arith.select %109, %115, %13 : vector<8x128xi1>, vector<8x128xf32>
    %117 = vector.broadcast %104 : f32 to vector<8x128xf32>
    %118 = arith.mulf %117, %116 : vector<8x128xf32>
    %119 = arith.addf %90, %118 : vector<8x128xf32>
    %120 = arith.mulf %119, %119 : vector<8x128xf32>
    %c4_i32_37 = arith.constant 4 : i32
    %121 = tpu.dynamic_rotate %120 by %c4_i32_37 dim 0 : vector<8x128xf32>, i32 -> vector<8x128xf32>
    %122 = arith.addf %120, %121 : vector<8x128xf32>
    %cst_38 = arith.constant 0.000000e+00 : f32
    %123 = vector.broadcast %cst_38 : f32 to vector<8x128xf32>
    %124 = arith.cmpf ogt, %122, %123 : vector<8x128xf32>
    %125 = math.rsqrt %122 : vector<8x128xf32>
    %cst_39 = arith.constant 0.000000e+00 : f32
    %126 = vector.broadcast %cst_39 : f32 to vector<8x128xf32>
    %127 = arith.select %124, %125, %126 : vector<8x128xi1>, vector<8x128xf32>
    %128 = arith.mulf %10, %127 : vector<8x128xf32>
    %c4_i32_40 = arith.constant 4 : i32
    %129 = tpu.dynamic_rotate %119 by %c4_i32_40 dim 0 : vector<8x128xf32>, i32 -> vector<8x128xf32>
    %130 = arith.mulf %128, %129 : vector<8x128xf32>
    %131 = arith.select %124, %130, %13 : vector<8x128xi1>, vector<8x128xf32>
    %132 = vector.broadcast %104 : f32 to vector<8x128xf32>
    %133 = arith.mulf %132, %131 : vector<8x128xf32>
    %134 = arith.addf %90, %133 : vector<8x128xf32>
    %135 = arith.mulf %134, %134 : vector<8x128xf32>
    %c4_i32_41 = arith.constant 4 : i32
    %136 = tpu.dynamic_rotate %135 by %c4_i32_41 dim 0 : vector<8x128xf32>, i32 -> vector<8x128xf32>
    %137 = arith.addf %135, %136 : vector<8x128xf32>
    %cst_42 = arith.constant 0.000000e+00 : f32
    %138 = vector.broadcast %cst_42 : f32 to vector<8x128xf32>
    %139 = arith.cmpf ogt, %137, %138 : vector<8x128xf32>
    %140 = math.rsqrt %137 : vector<8x128xf32>
    %cst_43 = arith.constant 0.000000e+00 : f32
    %141 = vector.broadcast %cst_43 : f32 to vector<8x128xf32>
    %142 = arith.select %139, %140, %141 : vector<8x128xi1>, vector<8x128xf32>
    %143 = arith.mulf %10, %142 : vector<8x128xf32>
    %c4_i32_44 = arith.constant 4 : i32
    %144 = tpu.dynamic_rotate %134 by %c4_i32_44 dim 0 : vector<8x128xf32>, i32 -> vector<8x128xf32>
    %145 = arith.mulf %143, %144 : vector<8x128xf32>
    %146 = arith.select %139, %145, %13 : vector<8x128xi1>, vector<8x128xf32>
    %147 = vector.broadcast %103 : f32 to vector<8x128xf32>
    %148 = arith.mulf %147, %146 : vector<8x128xf32>
    %149 = arith.addf %90, %148 : vector<8x128xf32>
    %150 = arith.mulf %149, %149 : vector<8x128xf32>
    %c4_i32_45 = arith.constant 4 : i32
    %151 = tpu.dynamic_rotate %150 by %c4_i32_45 dim 0 : vector<8x128xf32>, i32 -> vector<8x128xf32>
    %152 = arith.addf %150, %151 : vector<8x128xf32>
    %cst_46 = arith.constant 0.000000e+00 : f32
    %153 = vector.broadcast %cst_46 : f32 to vector<8x128xf32>
    %154 = arith.cmpf ogt, %152, %153 : vector<8x128xf32>
    %155 = math.rsqrt %152 : vector<8x128xf32>
    %cst_47 = arith.constant 0.000000e+00 : f32
    %156 = vector.broadcast %cst_47 : f32 to vector<8x128xf32>
    %157 = arith.select %154, %155, %156 : vector<8x128xi1>, vector<8x128xf32>
    %158 = arith.mulf %10, %157 : vector<8x128xf32>
    %c4_i32_48 = arith.constant 4 : i32
    %159 = tpu.dynamic_rotate %149 by %c4_i32_48 dim 0 : vector<8x128xf32>, i32 -> vector<8x128xf32>
    %160 = arith.mulf %158, %159 : vector<8x128xf32>
    %161 = arith.select %154, %160, %13 : vector<8x128xi1>, vector<8x128xf32>
    %cst_49 = arith.constant 0.166666672 : f32
    %162 = arith.mulf %103, %cst_49 : f32
    %163 = arith.addf %131, %146 : vector<8x128xf32>
    %cst_50 = arith.constant 2.000000e+00 : f32
    %164 = vector.broadcast %cst_50 : f32 to vector<8x128xf32>
    %165 = arith.mulf %164, %163 : vector<8x128xf32>
    %166 = arith.addf %116, %165 : vector<8x128xf32>
    %167 = arith.addf %166, %161 : vector<8x128xf32>
    %168 = vector.broadcast %162 : f32 to vector<8x128xf32>
    %169 = arith.mulf %168, %167 : vector<8x128xf32>
    %170 = arith.addf %90, %169 : vector<8x128xf32>
    %c0_51 = arith.constant 0 : index
    %171 = arith.index_cast %c1_i32_28 : i32 to index
    %c0_52 = arith.constant 0 : index
    %c0_53 = arith.constant 0 : index
    %172 = vector.load %arg5[%c0_51, %171, %c0_52, %c0_53] : memref<1x8x8x128xf32, #tpu.memory_space<vmem>>, vector<1x1x8x128xf32>
    %173 = vector.shape_cast %172 : vector<1x1x8x128xf32> to vector<8x128xf32>
    %174 = vector.shape_cast %170 : vector<8x128xf32> to vector<1x1x8x128xf32>
    tpu.vector_store %arg5[%c0_51, %171, %c0_52, %c0_53], %174 {strides = array<i32>} : memref<1x8x8x128xf32, #tpu.memory_space<vmem>>, vector<1x1x8x128xf32>,
    %c2_i32 = arith.constant 2 : i32
    %c8_i32_54 = arith.constant 8 : i32
    %175 = arith.muli %arg1, %c8_i32_54 : i32
    %176 = arith.addi %175, %c2_i32 : i32
    %177 = arith.index_cast %176 : i32 to index
    %178 = memref.load %arg2[%177] : memref<8xf32, #tpu.memory_space<smem>>
    %c1_i32_55 = arith.constant 1 : i32
    %179 = arith.subi %176, %c1_i32_55 : i32
    %c0_i32_56 = arith.constant 0 : i32
    %180 = arith.maxsi %179, %c0_i32_56 : i32
    %181 = arith.index_cast %180 : i32 to index
    %182 = memref.load %arg2[%181] : memref<8xf32, #tpu.memory_space<smem>>
    %183 = arith.subf %178, %182 : f32
    %cst_57 = arith.constant 5.000000e-01 : f32
    %184 = arith.mulf %183, %cst_57 : f32
    %185 = arith.mulf %170, %170 : vector<8x128xf32>
    %c4_i32_58 = arith.constant 4 : i32
    %186 = tpu.dynamic_rotate %185 by %c4_i32_58 dim 0 : vector<8x128xf32>, i32 -> vector<8x128xf32>
    %187 = arith.addf %185, %186 : vector<8x128xf32>
    %cst_59 = arith.constant 0.000000e+00 : f32
    %188 = vector.broadcast %cst_59 : f32 to vector<8x128xf32>
    %189 = arith.cmpf ogt, %187, %188 : vector<8x128xf32>
    %190 = math.rsqrt %187 : vector<8x128xf32>
    %cst_60 = arith.constant 0.000000e+00 : f32
    %191 = vector.broadcast %cst_60 : f32 to vector<8x128xf32>
    %192 = arith.select %189, %190, %191 : vector<8x128xi1>, vector<8x128xf32>
    %193 = arith.mulf %10, %192 : vector<8x128xf32>
    %c4_i32_61 = arith.constant 4 : i32
    %194 = tpu.dynamic_rotate %170 by %c4_i32_61 dim 0 : vector<8x128xf32>, i32 -> vector<8x128xf32>
    %195 = arith.mulf %193, %194 : vector<8x128xf32>
    %196 = arith.select %189, %195, %13 : vector<8x128xi1>, vector<8x128xf32>
    %197 = vector.broadcast %184 : f32 to vector<8x128xf32>
    %198 = arith.mulf %197, %196 : vector<8x128xf32>
    %199 = arith.addf %170, %198 : vector<8x128xf32>
    %200 = arith.mulf %199, %199 : vector<8x128xf32>
    %c4_i32_62 = arith.constant 4 : i32
    %201 = tpu.dynamic_rotate %200 by %c4_i32_62 dim 0 : vector<8x128xf32>, i32 -> vector<8x128xf32>
    %202 = arith.addf %200, %201 : vector<8x128xf32>
    %cst_63 = arith.constant 0.000000e+00 : f32
    %203 = vector.broadcast %cst_63 : f32 to vector<8x128xf32>
    %204 = arith.cmpf ogt, %202, %203 : vector<8x128xf32>
    %205 = math.rsqrt %202 : vector<8x128xf32>
    %cst_64 = arith.constant 0.000000e+00 : f32
    %206 = vector.broadcast %cst_64 : f32 to vector<8x128xf32>
    %207 = arith.select %204, %205, %206 : vector<8x128xi1>, vector<8x128xf32>
    %208 = arith.mulf %10, %207 : vector<8x128xf32>
    %c4_i32_65 = arith.constant 4 : i32
    %209 = tpu.dynamic_rotate %199 by %c4_i32_65 dim 0 : vector<8x128xf32>, i32 -> vector<8x128xf32>
    %210 = arith.mulf %208, %209 : vector<8x128xf32>
    %211 = arith.select %204, %210, %13 : vector<8x128xi1>, vector<8x128xf32>
    %212 = vector.broadcast %184 : f32 to vector<8x128xf32>
    %213 = arith.mulf %212, %211 : vector<8x128xf32>
    %214 = arith.addf %170, %213 : vector<8x128xf32>
    %215 = arith.mulf %214, %214 : vector<8x128xf32>
    %c4_i32_66 = arith.constant 4 : i32
    %216 = tpu.dynamic_rotate %215 by %c4_i32_66 dim 0 : vector<8x128xf32>, i32 -> vector<8x128xf32>
    %217 = arith.addf %215, %216 : vector<8x128xf32>
    %cst_67 = arith.constant 0.000000e+00 : f32
    %218 = vector.broadcast %cst_67 : f32 to vector<8x128xf32>
    %219 = arith.cmpf ogt, %217, %218 : vector<8x128xf32>
    %220 = math.rsqrt %217 : vector<8x128xf32>
    %cst_68 = arith.constant 0.000000e+00 : f32
    %221 = vector.broadcast %cst_68 : f32 to vector<8x128xf32>
    %222 = arith.select %219, %220, %221 : vector<8x128xi1>, vector<8x128xf32>
    %223 = arith.mulf %10, %222 : vector<8x128xf32>
    %c4_i32_69 = arith.constant 4 : i32
    %224 = tpu.dynamic_rotate %214 by %c4_i32_69 dim 0 : vector<8x128xf32>, i32 -> vector<8x128xf32>
    %225 = arith.mulf %223, %224 : vector<8x128xf32>
    %226 = arith.select %219, %225, %13 : vector<8x128xi1>, vector<8x128xf32>
    %227 = vector.broadcast %183 : f32 to vector<8x128xf32>
    %228 = arith.mulf %227, %226 : vector<8x128xf32>
    %229 = arith.addf %170, %228 : vector<8x128xf32>
    %230 = arith.mulf %229, %229 : vector<8x128xf32>
    %c4_i32_70 = arith.constant 4 : i32
    %231 = tpu.dynamic_rotate %230 by %c4_i32_70 dim 0 : vector<8x128xf32>, i32 -> vector<8x128xf32>
    %232 = arith.addf %230, %231 : vector<8x128xf32>
    %cst_71 = arith.constant 0.000000e+00 : f32
    %233 = vector.broadcast %cst_71 : f32 to vector<8x128xf32>
    %234 = arith.cmpf ogt, %232, %233 : vector<8x128xf32>
    %235 = math.rsqrt %232 : vector<8x128xf32>
    %cst_72 = arith.constant 0.000000e+00 : f32
    %236 = vector.broadcast %cst_72 : f32 to vector<8x128xf32>
    %237 = arith.select %234, %235, %236 : vector<8x128xi1>, vector<8x128xf32>
    %238 = arith.mulf %10, %237 : vector<8x128xf32>
    %c4_i32_73 = arith.constant 4 : i32
    %239 = tpu.dynamic_rotate %229 by %c4_i32_73 dim 0 : vector<8x128xf32>, i32 -> vector<8x128xf32>
    %240 = arith.mulf %238, %239 : vector<8x128xf32>
    %241 = arith.select %234, %240, %13 : vector<8x128xi1>, vector<8x128xf32>
    %cst_74 = arith.constant 0.166666672 : f32
    %242 = arith.mulf %183, %cst_74 : f32
    %243 = arith.addf %211, %226 : vector<8x128xf32>
    %cst_75 = arith.constant 2.000000e+00 : f32
    %244 = vector.broadcast %cst_75 : f32 to vector<8x128xf32>
    %245 = arith.mulf %244, %243 : vector<8x128xf32>
    %246 = arith.addf %196, %245 : vector<8x128xf32>
    %247 = arith.addf %246, %241 : vector<8x128xf32>
    %248 = vector.broadcast %242 : f32 to vector<8x128xf32>
    %249 = arith.mulf %248, %247 : vector<8x128xf32>
    %250 = arith.addf %170, %249 : vector<8x128xf32>
    %c0_76 = arith.constant 0 : index
    %251 = arith.index_cast %c2_i32 : i32 to index
    %c0_77 = arith.constant 0 : index
    %c0_78 = arith.constant 0 : index
    %252 = vector.load %arg5[%c0_76, %251, %c0_77, %c0_78] : memref<1x8x8x128xf32, #tpu.memory_space<vmem>>, vector<1x1x8x128xf32>
    %253 = vector.shape_cast %252 : vector<1x1x8x128xf32> to vector<8x128xf32>
    %254 = vector.shape_cast %250 : vector<8x128xf32> to vector<1x1x8x128xf32>
    tpu.vector_store %arg5[%c0_76, %251, %c0_77, %c0_78], %254 {strides = array<i32>} : memref<1x8x8x128xf32, #tpu.memory_space<vmem>>, vector<1x1x8x128xf32>,
    %c3_i32 = arith.constant 3 : i32
    %c8_i32_79 = arith.constant 8 : i32
    %255 = arith.muli %arg1, %c8_i32_79 : i32
    %256 = arith.addi %255, %c3_i32 : i32
    %257 = arith.index_cast %256 : i32 to index
    %258 = memref.load %arg2[%257] : memref<8xf32, #tpu.memory_space<smem>>
    %c1_i32_80 = arith.constant 1 : i32
    %259 = arith.subi %256, %c1_i32_80 : i32
    %c0_i32_81 = arith.constant 0 : i32
    %260 = arith.maxsi %259, %c0_i32_81 : i32
    %261 = arith.index_cast %260 : i32 to index
    %262 = memref.load %arg2[%261] : memref<8xf32, #tpu.memory_space<smem>>
    %263 = arith.subf %258, %262 : f32
    %cst_82 = arith.constant 5.000000e-01 : f32
    %264 = arith.mulf %263, %cst_82 : f32
    %265 = arith.mulf %250, %250 : vector<8x128xf32>
    %c4_i32_83 = arith.constant 4 : i32
    %266 = tpu.dynamic_rotate %265 by %c4_i32_83 dim 0 : vector<8x128xf32>, i32 -> vector<8x128xf32>
    %267 = arith.addf %265, %266 : vector<8x128xf32>
    %cst_84 = arith.constant 0.000000e+00 : f32
    %268 = vector.broadcast %cst_84 : f32 to vector<8x128xf32>
    %269 = arith.cmpf ogt, %267, %268 : vector<8x128xf32>
    %270 = math.rsqrt %267 : vector<8x128xf32>
    %cst_85 = arith.constant 0.000000e+00 : f32
    %271 = vector.broadcast %cst_85 : f32 to vector<8x128xf32>
    %272 = arith.select %269, %270, %271 : vector<8x128xi1>, vector<8x128xf32>
    %273 = arith.mulf %10, %272 : vector<8x128xf32>
    %c4_i32_86 = arith.constant 4 : i32
    %274 = tpu.dynamic_rotate %250 by %c4_i32_86 dim 0 : vector<8x128xf32>, i32 -> vector<8x128xf32>
    %275 = arith.mulf %273, %274 : vector<8x128xf32>
    %276 = arith.select %269, %275, %13 : vector<8x128xi1>, vector<8x128xf32>
    %277 = vector.broadcast %264 : f32 to vector<8x128xf32>
    %278 = arith.mulf %277, %276 : vector<8x128xf32>
    %279 = arith.addf %250, %278 : vector<8x128xf32>
    %280 = arith.mulf %279, %279 : vector<8x128xf32>
    %c4_i32_87 = arith.constant 4 : i32
    %281 = tpu.dynamic_rotate %280 by %c4_i32_87 dim 0 : vector<8x128xf32>, i32 -> vector<8x128xf32>
    %282 = arith.addf %280, %281 : vector<8x128xf32>
    %cst_88 = arith.constant 0.000000e+00 : f32
    %283 = vector.broadcast %cst_88 : f32 to vector<8x128xf32>
    %284 = arith.cmpf ogt, %282, %283 : vector<8x128xf32>
    %285 = math.rsqrt %282 : vector<8x128xf32>
    %cst_89 = arith.constant 0.000000e+00 : f32
    %286 = vector.broadcast %cst_89 : f32 to vector<8x128xf32>
    %287 = arith.select %284, %285, %286 : vector<8x128xi1>, vector<8x128xf32>
    %288 = arith.mulf %10, %287 : vector<8x128xf32>
    %c4_i32_90 = arith.constant 4 : i32
    %289 = tpu.dynamic_rotate %279 by %c4_i32_90 dim 0 : vector<8x128xf32>, i32 -> vector<8x128xf32>
    %290 = arith.mulf %288, %289 : vector<8x128xf32>
    %291 = arith.select %284, %290, %13 : vector<8x128xi1>, vector<8x128xf32>
    %292 = vector.broadcast %264 : f32 to vector<8x128xf32>
    %293 = arith.mulf %292, %291 : vector<8x128xf32>
    %294 = arith.addf %250, %293 : vector<8x128xf32>
    %295 = arith.mulf %294, %294 : vector<8x128xf32>
    %c4_i32_91 = arith.constant 4 : i32
    %296 = tpu.dynamic_rotate %295 by %c4_i32_91 dim 0 : vector<8x128xf32>, i32 -> vector<8x128xf32>
    %297 = arith.addf %295, %296 : vector<8x128xf32>
    %cst_92 = arith.constant 0.000000e+00 : f32
    %298 = vector.broadcast %cst_92 : f32 to vector<8x128xf32>
    %299 = arith.cmpf ogt, %297, %298 : vector<8x128xf32>
    %300 = math.rsqrt %297 : vector<8x128xf32>
    %cst_93 = arith.constant 0.000000e+00 : f32
    %301 = vector.broadcast %cst_93 : f32 to vector<8x128xf32>
    %302 = arith.select %299, %300, %301 : vector<8x128xi1>, vector<8x128xf32>
    %303 = arith.mulf %10, %302 : vector<8x128xf32>
    %c4_i32_94 = arith.constant 4 : i32
    %304 = tpu.dynamic_rotate %294 by %c4_i32_94 dim 0 : vector<8x128xf32>, i32 -> vector<8x128xf32>
    %305 = arith.mulf %303, %304 : vector<8x128xf32>
    %306 = arith.select %299, %305, %13 : vector<8x128xi1>, vector<8x128xf32>
    %307 = vector.broadcast %263 : f32 to vector<8x128xf32>
    %308 = arith.mulf %307, %306 : vector<8x128xf32>
    %309 = arith.addf %250, %308 : vector<8x128xf32>
    %310 = arith.mulf %309, %309 : vector<8x128xf32>
    %c4_i32_95 = arith.constant 4 : i32
    %311 = tpu.dynamic_rotate %310 by %c4_i32_95 dim 0 : vector<8x128xf32>, i32 -> vector<8x128xf32>
    %312 = arith.addf %310, %311 : vector<8x128xf32>
    %cst_96 = arith.constant 0.000000e+00 : f32
    %313 = vector.broadcast %cst_96 : f32 to vector<8x128xf32>
    %314 = arith.cmpf ogt, %312, %313 : vector<8x128xf32>
    %315 = math.rsqrt %312 : vector<8x128xf32>
    %cst_97 = arith.constant 0.000000e+00 : f32
    %316 = vector.broadcast %cst_97 : f32 to vector<8x128xf32>
    %317 = arith.select %314, %315, %316 : vector<8x128xi1>, vector<8x128xf32>
    %318 = arith.mulf %10, %317 : vector<8x128xf32>
    %c4_i32_98 = arith.constant 4 : i32
    %319 = tpu.dynamic_rotate %309 by %c4_i32_98 dim 0 : vector<8x128xf32>, i32 -> vector<8x128xf32>
    %320 = arith.mulf %318, %319 : vector<8x128xf32>
    %321 = arith.select %314, %320, %13 : vector<8x128xi1>, vector<8x128xf32>
    %cst_99 = arith.constant 0.166666672 : f32
    %322 = arith.mulf %263, %cst_99 : f32
    %323 = arith.addf %291, %306 : vector<8x128xf32>
    %cst_100 = arith.constant 2.000000e+00 : f32
    %324 = vector.broadcast %cst_100 : f32 to vector<8x128xf32>
    %325 = arith.mulf %324, %323 : vector<8x128xf32>
    %326 = arith.addf %276, %325 : vector<8x128xf32>
    %327 = arith.addf %326, %321 : vector<8x128xf32>
    %328 = vector.broadcast %322 : f32 to vector<8x128xf32>
    %329 = arith.mulf %328, %327 : vector<8x128xf32>
    %330 = arith.addf %250, %329 : vector<8x128xf32>
    %c0_101 = arith.constant 0 : index
    %331 = arith.index_cast %c3_i32 : i32 to index
    %c0_102 = arith.constant 0 : index
    %c0_103 = arith.constant 0 : index
    %332 = vector.load %arg5[%c0_101, %331, %c0_102, %c0_103] : memref<1x8x8x128xf32, #tpu.memory_space<vmem>>, vector<1x1x8x128xf32>
    %333 = vector.shape_cast %332 : vector<1x1x8x128xf32> to vector<8x128xf32>
    %334 = vector.shape_cast %330 : vector<8x128xf32> to vector<1x1x8x128xf32>
    tpu.vector_store %arg5[%c0_101, %331, %c0_102, %c0_103], %334 {strides = array<i32>} : memref<1x8x8x128xf32, #tpu.memory_space<vmem>>, vector<1x1x8x128xf32>,
    %c4_i32_104 = arith.constant 4 : i32
    %c8_i32_105 = arith.constant 8 : i32
    %335 = arith.muli %arg1, %c8_i32_105 : i32
    %336 = arith.addi %335, %c4_i32_104 : i32
    %337 = arith.index_cast %336 : i32 to index
    %338 = memref.load %arg2[%337] : memref<8xf32, #tpu.memory_space<smem>>
    %c1_i32_106 = arith.constant 1 : i32
    %339 = arith.subi %336, %c1_i32_106 : i32
    %c0_i32_107 = arith.constant 0 : i32
    %340 = arith.maxsi %339, %c0_i32_107 : i32
    %341 = arith.index_cast %340 : i32 to index
    %342 = memref.load %arg2[%341] : memref<8xf32, #tpu.memory_space<smem>>
    %343 = arith.subf %338, %342 : f32
    %cst_108 = arith.constant 5.000000e-01 : f32
    %344 = arith.mulf %343, %cst_108 : f32
    %345 = arith.mulf %330, %330 : vector<8x128xf32>
    %c4_i32_109 = arith.constant 4 : i32
    %346 = tpu.dynamic_rotate %345 by %c4_i32_109 dim 0 : vector<8x128xf32>, i32 -> vector<8x128xf32>
    %347 = arith.addf %345, %346 : vector<8x128xf32>
    %cst_110 = arith.constant 0.000000e+00 : f32
    %348 = vector.broadcast %cst_110 : f32 to vector<8x128xf32>
    %349 = arith.cmpf ogt, %347, %348 : vector<8x128xf32>
    %350 = math.rsqrt %347 : vector<8x128xf32>
    %cst_111 = arith.constant 0.000000e+00 : f32
    %351 = vector.broadcast %cst_111 : f32 to vector<8x128xf32>
    %352 = arith.select %349, %350, %351 : vector<8x128xi1>, vector<8x128xf32>
    %353 = arith.mulf %10, %352 : vector<8x128xf32>
    %c4_i32_112 = arith.constant 4 : i32
    %354 = tpu.dynamic_rotate %330 by %c4_i32_112 dim 0 : vector<8x128xf32>, i32 -> vector<8x128xf32>
    %355 = arith.mulf %353, %354 : vector<8x128xf32>
    %356 = arith.select %349, %355, %13 : vector<8x128xi1>, vector<8x128xf32>
    %357 = vector.broadcast %344 : f32 to vector<8x128xf32>
    %358 = arith.mulf %357, %356 : vector<8x128xf32>
    %359 = arith.addf %330, %358 : vector<8x128xf32>
    %360 = arith.mulf %359, %359 : vector<8x128xf32>
    %c4_i32_113 = arith.constant 4 : i32
    %361 = tpu.dynamic_rotate %360 by %c4_i32_113 dim 0 : vector<8x128xf32>, i32 -> vector<8x128xf32>
    %362 = arith.addf %360, %361 : vector<8x128xf32>
    %cst_114 = arith.constant 0.000000e+00 : f32
    %363 = vector.broadcast %cst_114 : f32 to vector<8x128xf32>
    %364 = arith.cmpf ogt, %362, %363 : vector<8x128xf32>
    %365 = math.rsqrt %362 : vector<8x128xf32>
    %cst_115 = arith.constant 0.000000e+00 : f32
    %366 = vector.broadcast %cst_115 : f32 to vector<8x128xf32>
    %367 = arith.select %364, %365, %366 : vector<8x128xi1>, vector<8x128xf32>
    %368 = arith.mulf %10, %367 : vector<8x128xf32>
    %c4_i32_116 = arith.constant 4 : i32
    %369 = tpu.dynamic_rotate %359 by %c4_i32_116 dim 0 : vector<8x128xf32>, i32 -> vector<8x128xf32>
    %370 = arith.mulf %368, %369 : vector<8x128xf32>
    %371 = arith.select %364, %370, %13 : vector<8x128xi1>, vector<8x128xf32>
    %372 = vector.broadcast %344 : f32 to vector<8x128xf32>
    %373 = arith.mulf %372, %371 : vector<8x128xf32>
    %374 = arith.addf %330, %373 : vector<8x128xf32>
    %375 = arith.mulf %374, %374 : vector<8x128xf32>
    %c4_i32_117 = arith.constant 4 : i32
    %376 = tpu.dynamic_rotate %375 by %c4_i32_117 dim 0 : vector<8x128xf32>, i32 -> vector<8x128xf32>
    %377 = arith.addf %375, %376 : vector<8x128xf32>
    %cst_118 = arith.constant 0.000000e+00 : f32
    %378 = vector.broadcast %cst_118 : f32 to vector<8x128xf32>
    %379 = arith.cmpf ogt, %377, %378 : vector<8x128xf32>
    %380 = math.rsqrt %377 : vector<8x128xf32>
    %cst_119 = arith.constant 0.000000e+00 : f32
    %381 = vector.broadcast %cst_119 : f32 to vector<8x128xf32>
    %382 = arith.select %379, %380, %381 : vector<8x128xi1>, vector<8x128xf32>
    %383 = arith.mulf %10, %382 : vector<8x128xf32>
    %c4_i32_120 = arith.constant 4 : i32
    %384 = tpu.dynamic_rotate %374 by %c4_i32_120 dim 0 : vector<8x128xf32>, i32 -> vector<8x128xf32>
    %385 = arith.mulf %383, %384 : vector<8x128xf32>
    %386 = arith.select %379, %385, %13 : vector<8x128xi1>, vector<8x128xf32>
    %387 = vector.broadcast %343 : f32 to vector<8x128xf32>
    %388 = arith.mulf %387, %386 : vector<8x128xf32>
    %389 = arith.addf %330, %388 : vector<8x128xf32>
    %390 = arith.mulf %389, %389 : vector<8x128xf32>
    %c4_i32_121 = arith.constant 4 : i32
    %391 = tpu.dynamic_rotate %390 by %c4_i32_121 dim 0 : vector<8x128xf32>, i32 -> vector<8x128xf32>
    %392 = arith.addf %390, %391 : vector<8x128xf32>
    %cst_122 = arith.constant 0.000000e+00 : f32
    %393 = vector.broadcast %cst_122 : f32 to vector<8x128xf32>
    %394 = arith.cmpf ogt, %392, %393 : vector<8x128xf32>
    %395 = math.rsqrt %392 : vector<8x128xf32>
    %cst_123 = arith.constant 0.000000e+00 : f32
    %396 = vector.broadcast %cst_123 : f32 to vector<8x128xf32>
    %397 = arith.select %394, %395, %396 : vector<8x128xi1>, vector<8x128xf32>
    %398 = arith.mulf %10, %397 : vector<8x128xf32>
    %c4_i32_124 = arith.constant 4 : i32
    %399 = tpu.dynamic_rotate %389 by %c4_i32_124 dim 0 : vector<8x128xf32>, i32 -> vector<8x128xf32>
    %400 = arith.mulf %398, %399 : vector<8x128xf32>
    %401 = arith.select %394, %400, %13 : vector<8x128xi1>, vector<8x128xf32>
    %cst_125 = arith.constant 0.166666672 : f32
    %402 = arith.mulf %343, %cst_125 : f32
    %403 = arith.addf %371, %386 : vector<8x128xf32>
    %cst_126 = arith.constant 2.000000e+00 : f32
    %404 = vector.broadcast %cst_126 : f32 to vector<8x128xf32>
    %405 = arith.mulf %404, %403 : vector<8x128xf32>
    %406 = arith.addf %356, %405 : vector<8x128xf32>
    %407 = arith.addf %406, %401 : vector<8x128xf32>
    %408 = vector.broadcast %402 : f32 to vector<8x128xf32>
    %409 = arith.mulf %408, %407 : vector<8x128xf32>
    %410 = arith.addf %330, %409 : vector<8x128xf32>
    %c0_127 = arith.constant 0 : index
    %411 = arith.index_cast %c4_i32_104 : i32 to index
    %c0_128 = arith.constant 0 : index
    %c0_129 = arith.constant 0 : index
    %412 = vector.load %arg5[%c0_127, %411, %c0_128, %c0_129] : memref<1x8x8x128xf32, #tpu.memory_space<vmem>>, vector<1x1x8x128xf32>
    %413 = vector.shape_cast %412 : vector<1x1x8x128xf32> to vector<8x128xf32>
    %414 = vector.shape_cast %410 : vector<8x128xf32> to vector<1x1x8x128xf32>
    tpu.vector_store %arg5[%c0_127, %411, %c0_128, %c0_129], %414 {strides = array<i32>} : memref<1x8x8x128xf32, #tpu.memory_space<vmem>>, vector<1x1x8x128xf32>,
    %c5_i32 = arith.constant 5 : i32
    %c8_i32_130 = arith.constant 8 : i32
    %415 = arith.muli %arg1, %c8_i32_130 : i32
    %416 = arith.addi %415, %c5_i32 : i32
    %417 = arith.index_cast %416 : i32 to index
    %418 = memref.load %arg2[%417] : memref<8xf32, #tpu.memory_space<smem>>
    %c1_i32_131 = arith.constant 1 : i32
    %419 = arith.subi %416, %c1_i32_131 : i32
    %c0_i32_132 = arith.constant 0 : i32
    %420 = arith.maxsi %419, %c0_i32_132 : i32
    %421 = arith.index_cast %420 : i32 to index
    %422 = memref.load %arg2[%421] : memref<8xf32, #tpu.memory_space<smem>>
    %423 = arith.subf %418, %422 : f32
    %cst_133 = arith.constant 5.000000e-01 : f32
    %424 = arith.mulf %423, %cst_133 : f32
    %425 = arith.mulf %410, %410 : vector<8x128xf32>
    %c4_i32_134 = arith.constant 4 : i32
    %426 = tpu.dynamic_rotate %425 by %c4_i32_134 dim 0 : vector<8x128xf32>, i32 -> vector<8x128xf32>
    %427 = arith.addf %425, %426 : vector<8x128xf32>
    %cst_135 = arith.constant 0.000000e+00 : f32
    %428 = vector.broadcast %cst_135 : f32 to vector<8x128xf32>
    %429 = arith.cmpf ogt, %427, %428 : vector<8x128xf32>
    %430 = math.rsqrt %427 : vector<8x128xf32>
    %cst_136 = arith.constant 0.000000e+00 : f32
    %431 = vector.broadcast %cst_136 : f32 to vector<8x128xf32>
    %432 = arith.select %429, %430, %431 : vector<8x128xi1>, vector<8x128xf32>
    %433 = arith.mulf %10, %432 : vector<8x128xf32>
    %c4_i32_137 = arith.constant 4 : i32
    %434 = tpu.dynamic_rotate %410 by %c4_i32_137 dim 0 : vector<8x128xf32>, i32 -> vector<8x128xf32>
    %435 = arith.mulf %433, %434 : vector<8x128xf32>
    %436 = arith.select %429, %435, %13 : vector<8x128xi1>, vector<8x128xf32>
    %437 = vector.broadcast %424 : f32 to vector<8x128xf32>
    %438 = arith.mulf %437, %436 : vector<8x128xf32>
    %439 = arith.addf %410, %438 : vector<8x128xf32>
    %440 = arith.mulf %439, %439 : vector<8x128xf32>
    %c4_i32_138 = arith.constant 4 : i32
    %441 = tpu.dynamic_rotate %440 by %c4_i32_138 dim 0 : vector<8x128xf32>, i32 -> vector<8x128xf32>
    %442 = arith.addf %440, %441 : vector<8x128xf32>
    %cst_139 = arith.constant 0.000000e+00 : f32
    %443 = vector.broadcast %cst_139 : f32 to vector<8x128xf32>
    %444 = arith.cmpf ogt, %442, %443 : vector<8x128xf32>
    %445 = math.rsqrt %442 : vector<8x128xf32>
    %cst_140 = arith.constant 0.000000e+00 : f32
    %446 = vector.broadcast %cst_140 : f32 to vector<8x128xf32>
    %447 = arith.select %444, %445, %446 : vector<8x128xi1>, vector<8x128xf32>
    %448 = arith.mulf %10, %447 : vector<8x128xf32>
    %c4_i32_141 = arith.constant 4 : i32
    %449 = tpu.dynamic_rotate %439 by %c4_i32_141 dim 0 : vector<8x128xf32>, i32 -> vector<8x128xf32>
    %450 = arith.mulf %448, %449 : vector<8x128xf32>
    %451 = arith.select %444, %450, %13 : vector<8x128xi1>, vector<8x128xf32>
    %452 = vector.broadcast %424 : f32 to vector<8x128xf32>
    %453 = arith.mulf %452, %451 : vector<8x128xf32>
    %454 = arith.addf %410, %453 : vector<8x128xf32>
    %455 = arith.mulf %454, %454 : vector<8x128xf32>
    %c4_i32_142 = arith.constant 4 : i32
    %456 = tpu.dynamic_rotate %455 by %c4_i32_142 dim 0 : vector<8x128xf32>, i32 -> vector<8x128xf32>
    %457 = arith.addf %455, %456 : vector<8x128xf32>
    %cst_143 = arith.constant 0.000000e+00 : f32
    %458 = vector.broadcast %cst_143 : f32 to vector<8x128xf32>
    %459 = arith.cmpf ogt, %457, %458 : vector<8x128xf32>
    %460 = math.rsqrt %457 : vector<8x128xf32>
    %cst_144 = arith.constant 0.000000e+00 : f32
    %461 = vector.broadcast %cst_144 : f32 to vector<8x128xf32>
    %462 = arith.select %459, %460, %461 : vector<8x128xi1>, vector<8x128xf32>
    %463 = arith.mulf %10, %462 : vector<8x128xf32>
    %c4_i32_145 = arith.constant 4 : i32
    %464 = tpu.dynamic_rotate %454 by %c4_i32_145 dim 0 : vector<8x128xf32>, i32 -> vector<8x128xf32>
    %465 = arith.mulf %463, %464 : vector<8x128xf32>
    %466 = arith.select %459, %465, %13 : vector<8x128xi1>, vector<8x128xf32>
    %467 = vector.broadcast %423 : f32 to vector<8x128xf32>
    %468 = arith.mulf %467, %466 : vector<8x128xf32>
    %469 = arith.addf %410, %468 : vector<8x128xf32>
    %470 = arith.mulf %469, %469 : vector<8x128xf32>
    %c4_i32_146 = arith.constant 4 : i32
    %471 = tpu.dynamic_rotate %470 by %c4_i32_146 dim 0 : vector<8x128xf32>, i32 -> vector<8x128xf32>
    %472 = arith.addf %470, %471 : vector<8x128xf32>
    %cst_147 = arith.constant 0.000000e+00 : f32
    %473 = vector.broadcast %cst_147 : f32 to vector<8x128xf32>
    %474 = arith.cmpf ogt, %472, %473 : vector<8x128xf32>
    %475 = math.rsqrt %472 : vector<8x128xf32>
    %cst_148 = arith.constant 0.000000e+00 : f32
    %476 = vector.broadcast %cst_148 : f32 to vector<8x128xf32>
    %477 = arith.select %474, %475, %476 : vector<8x128xi1>, vector<8x128xf32>
    %478 = arith.mulf %10, %477 : vector<8x128xf32>
    %c4_i32_149 = arith.constant 4 : i32
    %479 = tpu.dynamic_rotate %469 by %c4_i32_149 dim 0 : vector<8x128xf32>, i32 -> vector<8x128xf32>
    %480 = arith.mulf %478, %479 : vector<8x128xf32>
    %481 = arith.select %474, %480, %13 : vector<8x128xi1>, vector<8x128xf32>
    %cst_150 = arith.constant 0.166666672 : f32
    %482 = arith.mulf %423, %cst_150 : f32
    %483 = arith.addf %451, %466 : vector<8x128xf32>
    %cst_151 = arith.constant 2.000000e+00 : f32
    %484 = vector.broadcast %cst_151 : f32 to vector<8x128xf32>
    %485 = arith.mulf %484, %483 : vector<8x128xf32>
    %486 = arith.addf %436, %485 : vector<8x128xf32>
    %487 = arith.addf %486, %481 : vector<8x128xf32>
    %488 = vector.broadcast %482 : f32 to vector<8x128xf32>
    %489 = arith.mulf %488, %487 : vector<8x128xf32>
    %490 = arith.addf %410, %489 : vector<8x128xf32>
    %c0_152 = arith.constant 0 : index
    %491 = arith.index_cast %c5_i32 : i32 to index
    %c0_153 = arith.constant 0 : index
    %c0_154 = arith.constant 0 : index
    %492 = vector.load %arg5[%c0_152, %491, %c0_153, %c0_154] : memref<1x8x8x128xf32, #tpu.memory_space<vmem>>, vector<1x1x8x128xf32>
    %493 = vector.shape_cast %492 : vector<1x1x8x128xf32> to vector<8x128xf32>
    %494 = vector.shape_cast %490 : vector<8x128xf32> to vector<1x1x8x128xf32>
    tpu.vector_store %arg5[%c0_152, %491, %c0_153, %c0_154], %494 {strides = array<i32>} : memref<1x8x8x128xf32, #tpu.memory_space<vmem>>, vector<1x1x8x128xf32>,
    %c6_i32 = arith.constant 6 : i32
    %c8_i32_155 = arith.constant 8 : i32
    %495 = arith.muli %arg1, %c8_i32_155 : i32
    %496 = arith.addi %495, %c6_i32 : i32
    %497 = arith.index_cast %496 : i32 to index
    %498 = memref.load %arg2[%497] : memref<8xf32, #tpu.memory_space<smem>>
    %c1_i32_156 = arith.constant 1 : i32
    %499 = arith.subi %496, %c1_i32_156 : i32
    %c0_i32_157 = arith.constant 0 : i32
    %500 = arith.maxsi %499, %c0_i32_157 : i32
    %501 = arith.index_cast %500 : i32 to index
    %502 = memref.load %arg2[%501] : memref<8xf32, #tpu.memory_space<smem>>
    %503 = arith.subf %498, %502 : f32
    %cst_158 = arith.constant 5.000000e-01 : f32
    %504 = arith.mulf %503, %cst_158 : f32
    %505 = arith.mulf %490, %490 : vector<8x128xf32>
    %c4_i32_159 = arith.constant 4 : i32
    %506 = tpu.dynamic_rotate %505 by %c4_i32_159 dim 0 : vector<8x128xf32>, i32 -> vector<8x128xf32>
    %507 = arith.addf %505, %506 : vector<8x128xf32>
    %cst_160 = arith.constant 0.000000e+00 : f32
    %508 = vector.broadcast %cst_160 : f32 to vector<8x128xf32>
    %509 = arith.cmpf ogt, %507, %508 : vector<8x128xf32>
    %510 = math.rsqrt %507 : vector<8x128xf32>
    %cst_161 = arith.constant 0.000000e+00 : f32
    %511 = vector.broadcast %cst_161 : f32 to vector<8x128xf32>
    %512 = arith.select %509, %510, %511 : vector<8x128xi1>, vector<8x128xf32>
    %513 = arith.mulf %10, %512 : vector<8x128xf32>
    %c4_i32_162 = arith.constant 4 : i32
    %514 = tpu.dynamic_rotate %490 by %c4_i32_162 dim 0 : vector<8x128xf32>, i32 -> vector<8x128xf32>
    %515 = arith.mulf %513, %514 : vector<8x128xf32>
    %516 = arith.select %509, %515, %13 : vector<8x128xi1>, vector<8x128xf32>
    %517 = vector.broadcast %504 : f32 to vector<8x128xf32>
    %518 = arith.mulf %517, %516 : vector<8x128xf32>
    %519 = arith.addf %490, %518 : vector<8x128xf32>
    %520 = arith.mulf %519, %519 : vector<8x128xf32>
    %c4_i32_163 = arith.constant 4 : i32
    %521 = tpu.dynamic_rotate %520 by %c4_i32_163 dim 0 : vector<8x128xf32>, i32 -> vector<8x128xf32>
    %522 = arith.addf %520, %521 : vector<8x128xf32>
    %cst_164 = arith.constant 0.000000e+00 : f32
    %523 = vector.broadcast %cst_164 : f32 to vector<8x128xf32>
    %524 = arith.cmpf ogt, %522, %523 : vector<8x128xf32>
    %525 = math.rsqrt %522 : vector<8x128xf32>
    %cst_165 = arith.constant 0.000000e+00 : f32
    %526 = vector.broadcast %cst_165 : f32 to vector<8x128xf32>
    %527 = arith.select %524, %525, %526 : vector<8x128xi1>, vector<8x128xf32>
    %528 = arith.mulf %10, %527 : vector<8x128xf32>
    %c4_i32_166 = arith.constant 4 : i32
    %529 = tpu.dynamic_rotate %519 by %c4_i32_166 dim 0 : vector<8x128xf32>, i32 -> vector<8x128xf32>
    %530 = arith.mulf %528, %529 : vector<8x128xf32>
    %531 = arith.select %524, %530, %13 : vector<8x128xi1>, vector<8x128xf32>
    %532 = vector.broadcast %504 : f32 to vector<8x128xf32>
    %533 = arith.mulf %532, %531 : vector<8x128xf32>
    %534 = arith.addf %490, %533 : vector<8x128xf32>
    %535 = arith.mulf %534, %534 : vector<8x128xf32>
    %c4_i32_167 = arith.constant 4 : i32
    %536 = tpu.dynamic_rotate %535 by %c4_i32_167 dim 0 : vector<8x128xf32>, i32 -> vector<8x128xf32>
    %537 = arith.addf %535, %536 : vector<8x128xf32>
    %cst_168 = arith.constant 0.000000e+00 : f32
    %538 = vector.broadcast %cst_168 : f32 to vector<8x128xf32>
    %539 = arith.cmpf ogt, %537, %538 : vector<8x128xf32>
    %540 = math.rsqrt %537 : vector<8x128xf32>
    %cst_169 = arith.constant 0.000000e+00 : f32
    %541 = vector.broadcast %cst_169 : f32 to vector<8x128xf32>
    %542 = arith.select %539, %540, %541 : vector<8x128xi1>, vector<8x128xf32>
    %543 = arith.mulf %10, %542 : vector<8x128xf32>
    %c4_i32_170 = arith.constant 4 : i32
    %544 = tpu.dynamic_rotate %534 by %c4_i32_170 dim 0 : vector<8x128xf32>, i32 -> vector<8x128xf32>
    %545 = arith.mulf %543, %544 : vector<8x128xf32>
    %546 = arith.select %539, %545, %13 : vector<8x128xi1>, vector<8x128xf32>
    %547 = vector.broadcast %503 : f32 to vector<8x128xf32>
    %548 = arith.mulf %547, %546 : vector<8x128xf32>
    %549 = arith.addf %490, %548 : vector<8x128xf32>
    %550 = arith.mulf %549, %549 : vector<8x128xf32>
    %c4_i32_171 = arith.constant 4 : i32
    %551 = tpu.dynamic_rotate %550 by %c4_i32_171 dim 0 : vector<8x128xf32>, i32 -> vector<8x128xf32>
    %552 = arith.addf %550, %551 : vector<8x128xf32>
    %cst_172 = arith.constant 0.000000e+00 : f32
    %553 = vector.broadcast %cst_172 : f32 to vector<8x128xf32>
    %554 = arith.cmpf ogt, %552, %553 : vector<8x128xf32>
    %555 = math.rsqrt %552 : vector<8x128xf32>
    %cst_173 = arith.constant 0.000000e+00 : f32
    %556 = vector.broadcast %cst_173 : f32 to vector<8x128xf32>
    %557 = arith.select %554, %555, %556 : vector<8x128xi1>, vector<8x128xf32>
    %558 = arith.mulf %10, %557 : vector<8x128xf32>
    %c4_i32_174 = arith.constant 4 : i32
    %559 = tpu.dynamic_rotate %549 by %c4_i32_174 dim 0 : vector<8x128xf32>, i32 -> vector<8x128xf32>
    %560 = arith.mulf %558, %559 : vector<8x128xf32>
    %561 = arith.select %554, %560, %13 : vector<8x128xi1>, vector<8x128xf32>
    %cst_175 = arith.constant 0.166666672 : f32
    %562 = arith.mulf %503, %cst_175 : f32
    %563 = arith.addf %531, %546 : vector<8x128xf32>
    %cst_176 = arith.constant 2.000000e+00 : f32
    %564 = vector.broadcast %cst_176 : f32 to vector<8x128xf32>
    %565 = arith.mulf %564, %563 : vector<8x128xf32>
    %566 = arith.addf %516, %565 : vector<8x128xf32>
    %567 = arith.addf %566, %561 : vector<8x128xf32>
    %568 = vector.broadcast %562 : f32 to vector<8x128xf32>
    %569 = arith.mulf %568, %567 : vector<8x128xf32>
    %570 = arith.addf %490, %569 : vector<8x128xf32>
    %c0_177 = arith.constant 0 : index
    %571 = arith.index_cast %c6_i32 : i32 to index
    %c0_178 = arith.constant 0 : index
    %c0_179 = arith.constant 0 : index
    %572 = vector.load %arg5[%c0_177, %571, %c0_178, %c0_179] : memref<1x8x8x128xf32, #tpu.memory_space<vmem>>, vector<1x1x8x128xf32>
    %573 = vector.shape_cast %572 : vector<1x1x8x128xf32> to vector<8x128xf32>
    %574 = vector.shape_cast %570 : vector<8x128xf32> to vector<1x1x8x128xf32>
    tpu.vector_store %arg5[%c0_177, %571, %c0_178, %c0_179], %574 {strides = array<i32>} : memref<1x8x8x128xf32, #tpu.memory_space<vmem>>, vector<1x1x8x128xf32>,
    %c7_i32 = arith.constant 7 : i32
    %c8_i32_180 = arith.constant 8 : i32
    %575 = arith.muli %arg1, %c8_i32_180 : i32
    %576 = arith.addi %575, %c7_i32 : i32
    %577 = arith.index_cast %576 : i32 to index
    %578 = memref.load %arg2[%577] : memref<8xf32, #tpu.memory_space<smem>>
    %c1_i32_181 = arith.constant 1 : i32
    %579 = arith.subi %576, %c1_i32_181 : i32
    %c0_i32_182 = arith.constant 0 : i32
    %580 = arith.maxsi %579, %c0_i32_182 : i32
    %581 = arith.index_cast %580 : i32 to index
    %582 = memref.load %arg2[%581] : memref<8xf32, #tpu.memory_space<smem>>
    %583 = arith.subf %578, %582 : f32
    %cst_183 = arith.constant 5.000000e-01 : f32
    %584 = arith.mulf %583, %cst_183 : f32
    %585 = arith.mulf %570, %570 : vector<8x128xf32>
    %c4_i32_184 = arith.constant 4 : i32
    %586 = tpu.dynamic_rotate %585 by %c4_i32_184 dim 0 : vector<8x128xf32>, i32 -> vector<8x128xf32>
    %587 = arith.addf %585, %586 : vector<8x128xf32>
    %cst_185 = arith.constant 0.000000e+00 : f32
    %588 = vector.broadcast %cst_185 : f32 to vector<8x128xf32>
    %589 = arith.cmpf ogt, %587, %588 : vector<8x128xf32>
    %590 = math.rsqrt %587 : vector<8x128xf32>
    %cst_186 = arith.constant 0.000000e+00 : f32
    %591 = vector.broadcast %cst_186 : f32 to vector<8x128xf32>
    %592 = arith.select %589, %590, %591 : vector<8x128xi1>, vector<8x128xf32>
    %593 = arith.mulf %10, %592 : vector<8x128xf32>
    %c4_i32_187 = arith.constant 4 : i32
    %594 = tpu.dynamic_rotate %570 by %c4_i32_187 dim 0 : vector<8x128xf32>, i32 -> vector<8x128xf32>
    %595 = arith.mulf %593, %594 : vector<8x128xf32>
    %596 = arith.select %589, %595, %13 : vector<8x128xi1>, vector<8x128xf32>
    %597 = vector.broadcast %584 : f32 to vector<8x128xf32>
    %598 = arith.mulf %597, %596 : vector<8x128xf32>
    %599 = arith.addf %570, %598 : vector<8x128xf32>
    %600 = arith.mulf %599, %599 : vector<8x128xf32>
    %c4_i32_188 = arith.constant 4 : i32
    %601 = tpu.dynamic_rotate %600 by %c4_i32_188 dim 0 : vector<8x128xf32>, i32 -> vector<8x128xf32>
    %602 = arith.addf %600, %601 : vector<8x128xf32>
    %cst_189 = arith.constant 0.000000e+00 : f32
    %603 = vector.broadcast %cst_189 : f32 to vector<8x128xf32>
    %604 = arith.cmpf ogt, %602, %603 : vector<8x128xf32>
    %605 = math.rsqrt %602 : vector<8x128xf32>
    %cst_190 = arith.constant 0.000000e+00 : f32
    %606 = vector.broadcast %cst_190 : f32 to vector<8x128xf32>
    %607 = arith.select %604, %605, %606 : vector<8x128xi1>, vector<8x128xf32>
    %608 = arith.mulf %10, %607 : vector<8x128xf32>
    %c4_i32_191 = arith.constant 4 : i32
    %609 = tpu.dynamic_rotate %599 by %c4_i32_191 dim 0 : vector<8x128xf32>, i32 -> vector<8x128xf32>
    %610 = arith.mulf %608, %609 : vector<8x128xf32>
    %611 = arith.select %604, %610, %13 : vector<8x128xi1>, vector<8x128xf32>
    %612 = vector.broadcast %584 : f32 to vector<8x128xf32>
    %613 = arith.mulf %612, %611 : vector<8x128xf32>
    %614 = arith.addf %570, %613 : vector<8x128xf32>
    %615 = arith.mulf %614, %614 : vector<8x128xf32>
    %c4_i32_192 = arith.constant 4 : i32
    %616 = tpu.dynamic_rotate %615 by %c4_i32_192 dim 0 : vector<8x128xf32>, i32 -> vector<8x128xf32>
    %617 = arith.addf %615, %616 : vector<8x128xf32>
    %cst_193 = arith.constant 0.000000e+00 : f32
    %618 = vector.broadcast %cst_193 : f32 to vector<8x128xf32>
    %619 = arith.cmpf ogt, %617, %618 : vector<8x128xf32>
    %620 = math.rsqrt %617 : vector<8x128xf32>
    %cst_194 = arith.constant 0.000000e+00 : f32
    %621 = vector.broadcast %cst_194 : f32 to vector<8x128xf32>
    %622 = arith.select %619, %620, %621 : vector<8x128xi1>, vector<8x128xf32>
    %623 = arith.mulf %10, %622 : vector<8x128xf32>
    %c4_i32_195 = arith.constant 4 : i32
    %624 = tpu.dynamic_rotate %614 by %c4_i32_195 dim 0 : vector<8x128xf32>, i32 -> vector<8x128xf32>
    %625 = arith.mulf %623, %624 : vector<8x128xf32>
    %626 = arith.select %619, %625, %13 : vector<8x128xi1>, vector<8x128xf32>
    %627 = vector.broadcast %583 : f32 to vector<8x128xf32>
    %628 = arith.mulf %627, %626 : vector<8x128xf32>
    %629 = arith.addf %570, %628 : vector<8x128xf32>
    %630 = arith.mulf %629, %629 : vector<8x128xf32>
    %c4_i32_196 = arith.constant 4 : i32
    %631 = tpu.dynamic_rotate %630 by %c4_i32_196 dim 0 : vector<8x128xf32>, i32 -> vector<8x128xf32>
    %632 = arith.addf %630, %631 : vector<8x128xf32>
    %cst_197 = arith.constant 0.000000e+00 : f32
    %633 = vector.broadcast %cst_197 : f32 to vector<8x128xf32>
    %634 = arith.cmpf ogt, %632, %633 : vector<8x128xf32>
    %635 = math.rsqrt %632 : vector<8x128xf32>
    %cst_198 = arith.constant 0.000000e+00 : f32
    %636 = vector.broadcast %cst_198 : f32 to vector<8x128xf32>
    %637 = arith.select %634, %635, %636 : vector<8x128xi1>, vector<8x128xf32>
    %638 = arith.mulf %10, %637 : vector<8x128xf32>
    %c4_i32_199 = arith.constant 4 : i32
    %639 = tpu.dynamic_rotate %629 by %c4_i32_199 dim 0 : vector<8x128xf32>, i32 -> vector<8x128xf32>
    %640 = arith.mulf %638, %639 : vector<8x128xf32>
    %641 = arith.select %634, %640, %13 : vector<8x128xi1>, vector<8x128xf32>
    %cst_200 = arith.constant 0.166666672 : f32
    %642 = arith.mulf %583, %cst_200 : f32
    %643 = arith.addf %611, %626 : vector<8x128xf32>
    %cst_201 = arith.constant 2.000000e+00 : f32
    %644 = vector.broadcast %cst_201 : f32 to vector<8x128xf32>
    %645 = arith.mulf %644, %643 : vector<8x128xf32>
    %646 = arith.addf %596, %645 : vector<8x128xf32>
    %647 = arith.addf %646, %641 : vector<8x128xf32>
    %648 = vector.broadcast %642 : f32 to vector<8x128xf32>
    %649 = arith.mulf %648, %647 : vector<8x128xf32>
    %650 = arith.addf %570, %649 : vector<8x128xf32>
    %c0_202 = arith.constant 0 : index
    %651 = arith.index_cast %c7_i32 : i32 to index
    %c0_203 = arith.constant 0 : index
    %c0_204 = arith.constant 0 : index
    %652 = vector.load %arg5[%c0_202, %651, %c0_203, %c0_204] : memref<1x8x8x128xf32, #tpu.memory_space<vmem>>, vector<1x1x8x128xf32>
    %653 = vector.shape_cast %652 : vector<1x1x8x128xf32> to vector<8x128xf32>
    %654 = vector.shape_cast %650 : vector<8x128xf32> to vector<1x1x8x128xf32>
    tpu.vector_store %arg5[%c0_202, %651, %c0_203, %c0_204], %654 {strides = array<i32>} : memref<1x8x8x128xf32, #tpu.memory_space<vmem>>, vector<1x1x8x128xf32>,
    %c8_i32_205 = arith.constant 8 : i32
    %c0_206 = arith.constant 0 : index
    %c0_207 = arith.constant 0 : index
    %655 = vector.load %arg6[%c0_206, %c0_207] : memref<8x128xf32, #tpu.memory_space<vmem>>, vector<8x128xf32>
    tpu.vector_store %arg6[%c0_206, %c0_207], %650 {strides = array<i32>} : memref<8x128xf32, #tpu.memory_space<vmem>>, vector<8x128xf32>,
    return
  }
  func.func @transform_0(%arg0: i32, %arg1: i32) -> i32 {
    %c0_i32 = arith.constant 0 : i32
    %c0_i32_0 = arith.constant 0 : i32
    return %c0_i32 : i32
  }
  func.func @transform_1(%arg0: i32, %arg1: i32) -> i32 {
    %c0_i32 = arith.constant 0 : i32
    %c0_i32_0 = arith.constant 0 : i32
    return %c0_i32 : i32
  }
  func.func @transform_2(%arg0: i32, %arg1: i32) -> (i32, i32, i32) {
    %c0_i32 = arith.constant 0 : i32
    %c0_i32_0 = arith.constant 0 : i32
    %c0_i32_1 = arith.constant 0 : i32
    return %arg0, %c0_i32, %c0_i32_0 : i32, i32, i32
  }
  func.func @transform_3(%arg0: i32, %arg1: i32) -> (i32, i32, i32, i32) {
    %c0_i32 = arith.constant 0 : i32
    %c0_i32_0 = arith.constant 0 : i32
    %c0_i32_1 = arith.constant 0 : i32
    return %arg0, %arg1, %c0_i32, %c0_i32_0 : i32, i32, i32, i32
  }
}

</mosaic_0001>

<bundles_post_ra>
// kernel: analytical_circle_trajectory.1
= control target key start
LH: loop header
LB: loop body
LE: loop exit
PB: predicated region body
PF: predicated region fallthrough
CT: control target
= control target key end

     0   :  { %9 = vsyncpa [#allocation5], 0  ;;  %s942_s0 = inlined_call_operand.vmem [shape: f32[8], index: 0, kind: input, shape index: {}]   ;;  %s943_s1 = inlined_call_operand.<no memory space> [shape: f32[1], index: 1, kind: input, shape index: {}]   ;;  %s944_s2 = inlined_call_operand.vmem [shape: f32[1,8,128], index: 2, kind: input, shape index: {}]   ;;  %s945_s3 = inlined_call_operand.vmem [shape: f32[1,8,8,128], index: 3, kind: output, shape index: {}]  }
   0x1   :  { %s16_s14 = sshll.u32 %s942_s0, 4  ;;  %s17_s14 = int_to_ptr.vmem [resolvable:$true] %s16_s14 }
   0x2   :  { %s655_s15 = scalar_lea.vmem %s17_s14, 16  ;;  %p660_p1 = scmp.lt.s32.totalorder %s17_s14, %s17_s14 }
   0x3   :  { %p656_p0 = scmp.ne.s32.totalorder %s17_s14, %s655_s15  ;;  %p661_p2 = scmp.lt.s32.totalorder %s655_s15, %s655_s15 }
   0x5   :  { %p662_p3 = por %p661_p2, %p660_p1 }
   0x7   :  { %p663_p4 = pnand %p662_p3, %p656_p0 }
   0x9   :  { %666 = shalt.err (!%p663_p4)
}
   0xa   :  { %s669_s16 = smov [#allocation4]  }
   0xb   :  { %19 = dma.vmem_to_smem %s17_s14, 16, %s669_s16, [#allocation5]  }
   0xc   :  { %667 = dma.done.wait [#allocation5], 16  }
   0xd   :  { %668 = vsyncadd [#allocation5], 4294967280 }
   0xe   :  { %27 = sfence }
   0xf   :  { %v696_v0 = vld [vmem:[%s944_s2] sm:$0xff]  ;;  %v35_v3 = vlaneseq  ;;  %s700_s0 = sld [smem:[#allocation4]]  ;;  %s38_s21 = ssub.f32 0.0, %s943_s1  ;;  %v40_v7 = vstv %s943_s1 }
  0x10   :  { %v52_v1 = vmul.f32 %v696_v0, %v696_v0  ;;  %v59_v10 = vrot.slane %v696_v0, 4  ;;  %s740_s27 = sld [smem:[#allocation4 + $0x1]]  ;;  %s770_s6 = sld [smem:[#allocation4 + $0x2]] }
  0x11   :  { %v36_v5 = vshrl.u32 %v35_v3, 7  ;;  %v39_v6 = vstv %s38_s21  ;;  %s800_s12 = sld [smem:[#allocation4 + $0x3]]  ;;  %s830_s18 = sld [smem:[#allocation4 + $0x4]] }
  0x12   :  { %v53_v2 = vrot.slane %v52_v1, 4  ;;  %s860_s2 = sld [smem:[#allocation4 + $0x5]] }
  0x13   :  { %vm37_vm0 = vcmp.lt.s32.totalorder %v36_v5, 4 }
  0x14   :  { %v54_v4 = vadd.f32 %v53_v2, %v52_v1  ;;  %v712_v8 = vsel %vm37_vm0, %v39_v6, %v40_v7  ;;  %v717_v13 = vsel %vm37_vm0, 0.0, %v40_v7 }
  0x15   :  { %s710_s23 = ssub.f32 %s700_s0, %s700_s0 }
  0x16   :  { %591 = vrsqrt.f32 %v54_v4  ;;  %vm55_vm1 = vcmp.gt.f32.partialorder %v54_v4, 0.0  ;;  %s744_s28 = ssub.f32 %s740_s27, %s700_s0 }
  0x17   :  { %s51_s24 = smul.f32 0.5, %s710_s23  ;;  %v87_v38 = vstv %s710_s23  ;;  %s774_s7 = ssub.f32 %s770_s6, %s740_s27 }
  0x18   :  { %s100_s1 = smul.f32 0.16666667, %s710_s23  ;;  %s804_s13 = ssub.f32 %s800_s12, %s770_s6 }
  0x19   :  { %v62_v15 = vstv %s51_s24  ;;  %s115_s29 = smul.f32 0.5, %s744_s28  ;;  %s834_s0 = ssub.f32 %s830_s18, %s800_s12 }
  0x1a   :  { %v105_v54 = vstv %s100_s1  ;;  %s164_s30 = smul.f32 0.16666667, %s744_s28  ;;  %s864_s23 = ssub.f32 %s860_s2, %s830_s18 }
  0x1b   :  { %v126_v2 = vstv %s115_s29  ;;  %s180_s8 = smul.f32 0.5, %s774_s7  ;;  %s890_s27 = sld [smem:[#allocation4 + $0x6]] }
  0x1c   :  { %s229_s9 = smul.f32 0.16666667, %s774_s7  ;;  %s587_s6 = sld [smem:[#allocation4 + $0x7]] }
  0x1d   :  { %s245_s14 = smul.f32 0.5, %s804_s13 }
  0x1e   :  { %s294_s15 = smul.f32 0.16666667, %s804_s13 }
  0x1f   :  { %s310_s19 = smul.f32 0.5, %s834_s0 }
  0x20   :  { %v592_v9 = vpop.eup %591  ;;  %s359_s20 = smul.f32 0.16666667, %s834_s0 }
  0x21   :  { %v57_v11 = vsel %vm55_vm1, %v592_v9, 0.0  ;;  %s375_s24 = smul.f32 0.5, %s864_s23 }
  0x22   :  { %v58_v12 = vmul.f32 %v57_v11, %v712_v8  ;;  %s424_s1 = smul.f32 0.16666667, %s864_s23 }
  0x24   :  { %v60_v14 = vmul.f32 %v59_v10, %v58_v12 }
  0x26   :  { %v61_v16 = vsel %vm55_vm1, %v60_v14, %v717_v13 }
  0x27   :  { %v63_v17 = vmul.f32 %v62_v15, %v61_v16 }
  0x29   :  { %v64_v18 = vadd.f32 %v63_v17, %v696_v0 }
  0x2b   :  { %v65_v19 = vmul.f32 %v64_v18, %v64_v18  ;;  %v72_v23 = vrot.slane %v64_v18, 4 }
  0x2d   :  { %v66_v20 = vrot.slane %v65_v19, 4 }
  0x2f   :  { %v67_v21 = vadd.f32 %v66_v20, %v65_v19 }
  0x31   :  { %593 = vrsqrt.f32 %v67_v21  ;;  %vm68_vm2 = vcmp.gt.f32.partialorder %v67_v21, 0.0 }
  0x3b   :  { %v594_v22 = vpop.eup %593 }
  0x3c   :  { %v70_v24 = vsel %vm68_vm2, %v594_v22, 0.0 }
  0x3d   :  { %v71_v25 = vmul.f32 %v70_v24, %v712_v8 }
  0x3f   :  { %v73_v26 = vmul.f32 %v72_v23, %v71_v25 }
  0x41   :  { %v74_v27 = vsel %vm68_vm2, %v73_v26, %v717_v13 }
  0x42   :  { %v75_v28 = vmul.f32 %v74_v27, %v62_v15 }
  0x44   :  { %v76_v29 = vadd.f32 %v75_v28, %v696_v0 }
  0x46   :  { %v77_v30 = vmul.f32 %v76_v29, %v76_v29  ;;  %v84_v34 = vrot.slane %v76_v29, 4 }
  0x48   :  { %v78_v31 = vrot.slane %v77_v30, 4 }
  0x4a   :  { %v79_v32 = vadd.f32 %v78_v31, %v77_v30 }
  0x4c   :  { %595 = vrsqrt.f32 %v79_v32  ;;  %vm80_vm3 = vcmp.gt.f32.partialorder %v79_v32, 0.0 }
  0x56   :  { %v596_v33 = vpop.eup %595 }
  0x57   :  { %v82_v35 = vsel %vm80_vm3, %v596_v33, 0.0 }
  0x58   :  { %v83_v36 = vmul.f32 %v82_v35, %v712_v8 }
  0x5a   :  { %v85_v37 = vmul.f32 %v84_v34, %v83_v36 }
  0x5c   :  { %v86_v39 = vsel %vm80_vm3, %v85_v37, %v717_v13 }
  0x5d   :  { %v88_v40 = vmul.f32 %v87_v38, %v86_v39  ;;  %v101_v45 = vadd.f32 %v86_v39, %v74_v27  ;;  %v151_v27 = vstv %s744_s28  ;;  %s894_s28 = ssub.f32 %s890_s27, %s860_s2 }
  0x5f   :  { %v89_v41 = vadd.f32 %v88_v40, %v696_v0  ;;  %v102_v46 = vmul.f32 2.0, %v101_v45  ;;  %s440_s29 = smul.f32 0.5, %s894_s28 }
  0x61   :  { %v90_v42 = vmul.f32 %v89_v41, %v89_v41  ;;  %v97_v48 = vrot.slane %v89_v41, 4  ;;  %v103_v51 = vadd.f32 %v102_v46, %v61_v16 }
  0x63   :  { %v91_v43 = vrot.slane %v90_v42, 4 }
  0x65   :  { %v92_v44 = vadd.f32 %v91_v43, %v90_v42  ;;  %v169_v43 = vstv %s164_s30  ;;  %s489_s30 = smul.f32 0.16666667, %s894_s28 }
  0x67   :  { %597 = vrsqrt.f32 %v92_v44  ;;  %vm93_vm4 = vcmp.gt.f32.partialorder %v92_v44, 0.0 }
  0x71   :  { %v598_v47 = vpop.eup %597 }
  0x72   :  { %v95_v49 = vsel %vm93_vm4, %v598_v47, 0.0 }
  0x73   :  { %v96_v50 = vmul.f32 %v95_v49, %v712_v8 }
  0x75   :  { %v98_v52 = vmul.f32 %v97_v48, %v96_v50 }
  0x77   :  { %v99_v53 = vsel %vm93_vm4, %v98_v52, %v717_v13 }
  0x78   :  { %v104_v55 = vadd.f32 %v103_v51, %v99_v53 }
  0x7a   :  { %v106_v56 = vmul.f32 %v105_v54, %v104_v55  ;;  %v191_v55 = vstv %s180_s8 }
  0x7c   :  { %v732_v57 = vadd.f32 %v106_v56, %v696_v0 }
  0x7e   :  { %108 = vst [vmem:[%s945_s3] sm:$0xff] %v732_v57  ;;  %v116_v58 = vmul.f32 %v732_v57, %v732_v57  ;;  %v123_v62 = vrot.slane %v732_v57, 4 }
  0x80   :  { %v117_v59 = vrot.slane %v116_v58, 4 }
  0x82   :  { %v118_v60 = vadd.f32 %v117_v59, %v116_v58 }
  0x84   :  { %599 = vrsqrt.f32 %v118_v60  ;;  %vm119_vm5 = vcmp.gt.f32.partialorder %v118_v60, 0.0 }
  0x8e   :  { %v600_v61 = vpop.eup %599 }
  0x8f   :  { %v121_v63 = vsel %vm119_vm5, %v600_v61, 0.0 }
  0x90   :  { %v122_v0 = vmul.f32 %v121_v63, %v712_v8 }
  0x92   :  { %v124_v1 = vmul.f32 %v123_v62, %v122_v0 }
  0x94   :  { %v125_v3 = vsel %vm119_vm5, %v124_v1, %v717_v13 }
  0x95   :  { %v127_v4 = vmul.f32 %v126_v2, %v125_v3 }
  0x97   :  { %v128_v5 = vadd.f32 %v127_v4, %v732_v57 }
  0x99   :  { %v129_v6 = vmul.f32 %v128_v5, %v128_v5  ;;  %v136_v11 = vrot.slane %v128_v5, 4 }
  0x9b   :  { %v130_v7 = vrot.slane %v129_v6, 4 }
  0x9d   :  { %v131_v9 = vadd.f32 %v130_v7, %v129_v6 }
  0x9f   :  { %601 = vrsqrt.f32 %v131_v9  ;;  %vm132_vm6 = vcmp.gt.f32.partialorder %v131_v9, 0.0 }
  0xa9   :  { %v602_v10 = vpop.eup %601 }
  0xaa   :  { %v134_v12 = vsel %vm132_vm6, %v602_v10, 0.0 }
  0xab   :  { %v135_v14 = vmul.f32 %v134_v12, %v712_v8 }
  0xad   :  { %v137_v15 = vmul.f32 %v136_v11, %v135_v14 }
  0xaf   :  { %v138_v16 = vsel %vm132_vm6, %v137_v15, %v717_v13 }
  0xb0   :  { %v139_v17 = vmul.f32 %v138_v16, %v126_v2 }
  0xb2   :  { %v140_v18 = vadd.f32 %v139_v17, %v732_v57 }
  0xb4   :  { %v141_v19 = vmul.f32 %v140_v18, %v140_v18  ;;  %v148_v23 = vrot.slane %v140_v18, 4 }
  0xb6   :  { %v142_v20 = vrot.slane %v141_v19, 4 }
  0xb8   :  { %v143_v21 = vadd.f32 %v142_v20, %v141_v19 }
  0xba   :  { %603 = vrsqrt.f32 %v143_v21  ;;  %vm144_vm7 = vcmp.gt.f32.partialorder %v143_v21, 0.0 }
  0xc4   :  { %v604_v22 = vpop.eup %603 }
  0xc5   :  { %v146_v24 = vsel %vm144_vm7, %v604_v22, 0.0 }
  0xc6   :  { %v147_v25 = vmul.f32 %v146_v24, %v712_v8 }
  0xc8   :  { %v149_v26 = vmul.f32 %v148_v23, %v147_v25 }
  0xca   :  { %v150_v28 = vsel %vm144_vm7, %v149_v26, %v717_v13 }
  0xcb   :  { %v152_v29 = vmul.f32 %v151_v27, %v150_v28  ;;  %v165_v34 = vadd.f32 %v150_v28, %v138_v16  ;;  %v216_v16 = vstv %s774_s7  ;;  %s921_s7 = ssub.f32 %s587_s6, %s890_s27 }
  0xcd   :  { %v153_v30 = vadd.f32 %v152_v29, %v732_v57  ;;  %v166_v35 = vmul.f32 2.0, %v165_v34  ;;  %s505_s8 = smul.f32 0.5, %s921_s7 }
  0xcf   :  { %v154_v31 = vmul.f32 %v153_v30, %v153_v30  ;;  %v161_v37 = vrot.slane %v153_v30, 4  ;;  %v167_v40 = vadd.f32 %v166_v35, %v125_v3 }
  0xd1   :  { %v155_v32 = vrot.slane %v154_v31, 4 }
  0xd3   :  { %v156_v33 = vadd.f32 %v155_v32, %v154_v31  ;;  %v234_v32 = vstv %s229_s9  ;;  %s554_s9 = smul.f32 0.16666667, %s921_s7 }
  0xd5   :  { %605 = vrsqrt.f32 %v156_v33  ;;  %vm157_vm8 = vcmp.gt.f32.partialorder %v156_v33, 0.0 }
  0xdf   :  { %v606_v36 = vpop.eup %605 }
  0xe0   :  { %v159_v38 = vsel %vm157_vm8, %v606_v36, 0.0 }
  0xe1   :  { %v160_v39 = vmul.f32 %v159_v38, %v712_v8 }
  0xe3   :  { %v162_v41 = vmul.f32 %v161_v37, %v160_v39 }
  0xe5   :  { %v163_v42 = vsel %vm157_vm8, %v162_v41, %v717_v13 }
  0xe6   :  { %v168_v44 = vadd.f32 %v167_v40, %v163_v42 }
  0xe8   :  { %v170_v45 = vmul.f32 %v169_v43, %v168_v44  ;;  %v256_v44 = vstv %s245_s14 }
  0xea   :  { %v762_v46 = vadd.f32 %v170_v45, %v732_v57 }
  0xec   :  { %571 = vst [vmem:[%s945_s3 + $0x8] sm:$0xff] %v762_v46  ;;  %v181_v47 = vmul.f32 %v762_v46, %v762_v46  ;;  %v188_v51 = vrot.slane %v762_v46, 4 }
  0xee   :  { %v182_v48 = vrot.slane %v181_v47, 4 }
  0xf0   :  { %v183_v49 = vadd.f32 %v182_v48, %v181_v47 }
  0xf2   :  { %607 = vrsqrt.f32 %v183_v49  ;;  %vm184_vm9 = vcmp.gt.f32.partialorder %v183_v49, 0.0 }
  0xfc   :  { %v608_v50 = vpop.eup %607 }
  0xfd   :  { %v186_v52 = vsel %vm184_vm9, %v608_v50, 0.0 }
  0xfe   :  { %v187_v53 = vmul.f32 %v186_v52, %v712_v8 }
 0x100   :  { %v189_v54 = vmul.f32 %v188_v51, %v187_v53 }
 0x102   :  { %v190_v56 = vsel %vm184_vm9, %v189_v54, %v717_v13 }
 0x103   :  { %v192_v57 = vmul.f32 %v191_v55, %v190_v56 }
 0x105   :  { %v193_v58 = vadd.f32 %v192_v57, %v762_v46 }
 0x107   :  { %v194_v59 = vmul.f32 %v193_v58, %v193_v58  ;;  %v201_v63 = vrot.slane %v193_v58, 4 }
 0x109   :  { %v195_v60 = vrot.slane %v194_v59, 4 }
 0x10b   :  { %v196_v61 = vadd.f32 %v195_v60, %v194_v59 }
 0x10d   :  { %609 = vrsqrt.f32 %v196_v61  ;;  %vm197_vm10 = vcmp.gt.f32.partialorder %v196_v61, 0.0 }
 0x117   :  { %v610_v62 = vpop.eup %609 }
 0x118   :  { %v199_v0 = vsel %vm197_vm10, %v610_v62, 0.0 }
 0x119   :  { %v200_v1 = vmul.f32 %v199_v0, %v712_v8 }
 0x11b   :  { %v202_v2 = vmul.f32 %v201_v63, %v200_v1 }
 0x11d   :  { %v203_v3 = vsel %vm197_vm10, %v202_v2, %v717_v13 }
 0x11e   :  { %v204_v4 = vmul.f32 %v203_v3, %v191_v55 }
 0x120   :  { %v205_v5 = vadd.f32 %v204_v4, %v762_v46 }
 0x122   :  { %v206_v6 = vmul.f32 %v205_v5, %v205_v5  ;;  %v213_v11 = vrot.slane %v205_v5, 4 }
 0x124   :  { %v207_v7 = vrot.slane %v206_v6, 4 }
 0x126   :  { %v208_v9 = vadd.f32 %v207_v7, %v206_v6 }
 0x128   :  { %611 = vrsqrt.f32 %v208_v9  ;;  %vm209_vm11 = vcmp.gt.f32.partialorder %v208_v9, 0.0 }
 0x132   :  { %v612_v10 = vpop.eup %611 }
 0x133   :  { %v211_v12 = vsel %vm209_vm11, %v612_v10, 0.0 }
 0x134   :  { %v212_v14 = vmul.f32 %v211_v12, %v712_v8 }
 0x136   :  { %v214_v15 = vmul.f32 %v213_v11, %v212_v14 }
 0x138   :  { %v215_v17 = vsel %vm209_vm11, %v214_v15, %v717_v13 }
 0x139   :  { %v217_v18 = vmul.f32 %v216_v16, %v215_v17  ;;  %v230_v23 = vadd.f32 %v215_v17, %v203_v3  ;;  %v281_v3 = vstv %s804_s13 }
 0x13b   :  { %v218_v19 = vadd.f32 %v217_v18, %v762_v46  ;;  %v231_v24 = vmul.f32 2.0, %v230_v23 }
 0x13d   :  { %v219_v20 = vmul.f32 %v218_v19, %v218_v19  ;;  %v226_v26 = vrot.slane %v218_v19, 4  ;;  %v232_v29 = vadd.f32 %v231_v24, %v190_v56 }
 0x13f   :  { %v220_v21 = vrot.slane %v219_v20, 4 }
 0x141   :  { %v221_v22 = vadd.f32 %v220_v21, %v219_v20  ;;  %v299_v21 = vstv %s294_s15 }
 0x143   :  { %613 = vrsqrt.f32 %v221_v22  ;;  %vm222_vm12 = vcmp.gt.f32.partialorder %v221_v22, 0.0 }
 0x14d   :  { %v614_v25 = vpop.eup %613 }
 0x14e   :  { %v224_v27 = vsel %vm222_vm12, %v614_v25, 0.0 }
 0x14f   :  { %v225_v28 = vmul.f32 %v224_v27, %v712_v8 }
 0x151   :  { %v227_v30 = vmul.f32 %v226_v26, %v225_v28 }
 0x153   :  { %v228_v31 = vsel %vm222_vm12, %v227_v30, %v717_v13 }
 0x154   :  { %v233_v33 = vadd.f32 %v232_v29, %v228_v31 }
 0x156   :  { %v235_v34 = vmul.f32 %v234_v32, %v233_v33  ;;  %v321_v33 = vstv %s310_s19 }
 0x158   :  { %v792_v35 = vadd.f32 %v235_v34, %v762_v46 }
 0x15a   :  { %574 = vst [vmem:[%s945_s3 + $0x10] sm:$0xff] %v792_v35  ;;  %v246_v36 = vmul.f32 %v792_v35, %v792_v35  ;;  %v253_v40 = vrot.slane %v792_v35, 4 }
 0x15c   :  { %v247_v37 = vrot.slane %v246_v36, 4 }
 0x15e   :  { %v248_v38 = vadd.f32 %v247_v37, %v246_v36 }
 0x160   :  { %615 = vrsqrt.f32 %v248_v38  ;;  %vm249_vm13 = vcmp.gt.f32.partialorder %v248_v38, 0.0 }
 0x16a   :  { %v616_v39 = vpop.eup %615 }
 0x16b   :  { %v251_v41 = vsel %vm249_vm13, %v616_v39, 0.0 }
 0x16c   :  { %v252_v42 = vmul.f32 %v251_v41, %v712_v8 }
 0x16e   :  { %v254_v43 = vmul.f32 %v253_v40, %v252_v42 }
 0x170   :  { %v255_v45 = vsel %vm249_vm13, %v254_v43, %v717_v13 }
 0x171   :  { %v257_v46 = vmul.f32 %v256_v44, %v255_v45 }
 0x173   :  { %v258_v47 = vadd.f32 %v257_v46, %v792_v35 }
 0x175   :  { %v259_v48 = vmul.f32 %v258_v47, %v258_v47  ;;  %v266_v52 = vrot.slane %v258_v47, 4 }
 0x177   :  { %v260_v49 = vrot.slane %v259_v48, 4 }
 0x179   :  { %v261_v50 = vadd.f32 %v260_v49, %v259_v48 }
 0x17b   :  { %617 = vrsqrt.f32 %v261_v50  ;;  %vm262_vm14 = vcmp.gt.f32.partialorder %v261_v50, 0.0 }
 0x185   :  { %v618_v51 = vpop.eup %617 }
 0x186   :  { %v264_v53 = vsel %vm262_vm14, %v618_v51, 0.0 }
 0x187   :  { %v265_v54 = vmul.f32 %v264_v53, %v712_v8 }
 0x189   :  { %v267_v55 = vmul.f32 %v266_v52, %v265_v54 }
 0x18b   :  { %v268_v56 = vsel %vm262_vm14, %v267_v55, %v717_v13 }
 0x18c   :  { %v269_v57 = vmul.f32 %v268_v56, %v256_v44 }
 0x18e   :  { %v270_v58 = vadd.f32 %v269_v57, %v792_v35 }
 0x190   :  { %v271_v59 = vmul.f32 %v270_v58, %v270_v58  ;;  %v278_v63 = vrot.slane %v270_v58, 4 }
 0x192   :  { %v272_v60 = vrot.slane %v271_v59, 4 }
 0x194   :  { %v273_v61 = vadd.f32 %v272_v60, %v271_v59 }
 0x196   :  { %619 = vrsqrt.f32 %v273_v61  ;;  %vm274_vm15 = vcmp.gt.f32.partialorder %v273_v61, 0.0 }
 0x1a0   :  { %v620_v62 = vpop.eup %619 }
 0x1a1   :  { %v276_v0 = vsel %vm274_vm15, %v620_v62, 0.0 }
 0x1a2   :  { %v277_v1 = vmul.f32 %v276_v0, %v712_v8 }
 0x1a4   :  { %v279_v2 = vmul.f32 %v278_v63, %v277_v1 }
 0x1a6   :  { %v280_v4 = vsel %vm274_vm15, %v279_v2, %v717_v13 }
 0x1a7   :  { %v282_v5 = vmul.f32 %v281_v3, %v280_v4  ;;  %v295_v11 = vadd.f32 %v280_v4, %v268_v56  ;;  %v346_v56 = vstv %s834_s0 }
 0x1a9   :  { %v283_v6 = vadd.f32 %v282_v5, %v792_v35  ;;  %v296_v12 = vmul.f32 2.0, %v295_v11 }
 0x1ab   :  { %v284_v7 = vmul.f32 %v283_v6, %v283_v6  ;;  %v291_v15 = vrot.slane %v283_v6, 4  ;;  %v297_v18 = vadd.f32 %v296_v12, %v255_v45 }
 0x1ad   :  { %v285_v9 = vrot.slane %v284_v7, 4 }
 0x1af   :  { %v286_v10 = vadd.f32 %v285_v9, %v284_v7  ;;  %v364_v9 = vstv %s359_s20 }
 0x1b1   :  { %621 = vrsqrt.f32 %v286_v10  ;;  %vm287_vm0 = vcmp.gt.f32.partialorder %v286_v10, 0.0 }
 0x1bb   :  { %v622_v14 = vpop.eup %621 }
 0x1bc   :  { %v289_v16 = vsel %vm287_vm0, %v622_v14, 0.0 }
 0x1bd   :  { %v290_v17 = vmul.f32 %v289_v16, %v712_v8 }
 0x1bf   :  { %v292_v19 = vmul.f32 %v291_v15, %v290_v17 }
 0x1c1   :  { %v293_v20 = vsel %vm287_vm0, %v292_v19, %v717_v13 }
 0x1c2   :  { %v298_v22 = vadd.f32 %v297_v18, %v293_v20 }
 0x1c4   :  { %v300_v23 = vmul.f32 %v299_v21, %v298_v22  ;;  %v386_v22 = vstv %s375_s24 }
 0x1c6   :  { %v822_v24 = vadd.f32 %v300_v23, %v792_v35 }
 0x1c8   :  { %577 = vst [vmem:[%s945_s3 + $0x18] sm:$0xff] %v822_v24  ;;  %v311_v25 = vmul.f32 %v822_v24, %v822_v24  ;;  %v318_v29 = vrot.slane %v822_v24, 4 }
 0x1ca   :  { %v312_v26 = vrot.slane %v311_v25, 4 }
 0x1cc   :  { %v313_v27 = vadd.f32 %v312_v26, %v311_v25 }
 0x1ce   :  { %623 = vrsqrt.f32 %v313_v27  ;;  %vm314_vm1 = vcmp.gt.f32.partialorder %v313_v27, 0.0 }
 0x1d8   :  { %v624_v28 = vpop.eup %623 }
 0x1d9   :  { %v316_v30 = vsel %vm314_vm1, %v624_v28, 0.0 }
 0x1da   :  { %v317_v31 = vmul.f32 %v316_v30, %v712_v8 }
 0x1dc   :  { %v319_v32 = vmul.f32 %v318_v29, %v317_v31 }
 0x1de   :  { %v320_v34 = vsel %vm314_vm1, %v319_v32, %v717_v13 }
 0x1df   :  { %v322_v35 = vmul.f32 %v321_v33, %v320_v34 }
 0x1e1   :  { %v323_v36 = vadd.f32 %v322_v35, %v822_v24 }
 0x1e3   :  { %v324_v37 = vmul.f32 %v323_v36, %v323_v36  ;;  %v331_v41 = vrot.slane %v323_v36, 4 }
 0x1e5   :  { %v325_v38 = vrot.slane %v324_v37, 4 }
 0x1e7   :  { %v326_v39 = vadd.f32 %v325_v38, %v324_v37 }
 0x1e9   :  { %625 = vrsqrt.f32 %v326_v39  ;;  %vm327_vm2 = vcmp.gt.f32.partialorder %v326_v39, 0.0 }
 0x1f3   :  { %v626_v40 = vpop.eup %625 }
 0x1f4   :  { %v329_v42 = vsel %vm327_vm2, %v626_v40, 0.0 }
 0x1f5   :  { %v330_v43 = vmul.f32 %v329_v42, %v712_v8 }
 0x1f7   :  { %v332_v44 = vmul.f32 %v331_v41, %v330_v43 }
 0x1f9   :  { %v333_v45 = vsel %vm327_vm2, %v332_v44, %v717_v13 }
 0x1fa   :  { %v334_v46 = vmul.f32 %v333_v45, %v321_v33 }
 0x1fc   :  { %v335_v47 = vadd.f32 %v334_v46, %v822_v24 }
 0x1fe   :  { %v336_v48 = vmul.f32 %v335_v47, %v335_v47  ;;  %v343_v52 = vrot.slane %v335_v47, 4 }
 0x200   :  { %v337_v49 = vrot.slane %v336_v48, 4 }
 0x202   :  { %v338_v50 = vadd.f32 %v337_v49, %v336_v48 }
 0x204   :  { %627 = vrsqrt.f32 %v338_v50  ;;  %vm339_vm3 = vcmp.gt.f32.partialorder %v338_v50, 0.0 }
 0x20e   :  { %v628_v51 = vpop.eup %627 }
 0x20f   :  { %v341_v53 = vsel %vm339_vm3, %v628_v51, 0.0 }
 0x210   :  { %v342_v54 = vmul.f32 %v341_v53, %v712_v8 }
 0x212   :  { %v344_v55 = vmul.f32 %v343_v52, %v342_v54 }
 0x214   :  { %v345_v57 = vsel %vm339_vm3, %v344_v55, %v717_v13 }
 0x215   :  { %v347_v58 = vmul.f32 %v346_v56, %v345_v57  ;;  %v360_v63 = vadd.f32 %v345_v57, %v333_v45  ;;  %v411_v45 = vstv %s864_s23 }
 0x217   :  { %v348_v59 = vadd.f32 %v347_v58, %v822_v24  ;;  %v361_v0 = vmul.f32 2.0, %v360_v63 }
 0x219   :  { %v349_v60 = vmul.f32 %v348_v59, %v348_v59  ;;  %v356_v2 = vrot.slane %v348_v59, 4  ;;  %v362_v5 = vadd.f32 %v361_v0, %v320_v34 }
 0x21b   :  { %v350_v61 = vrot.slane %v349_v60, 4 }
 0x21d   :  { %v351_v62 = vadd.f32 %v350_v61, %v349_v60  ;;  %v429_v61 = vstv %s424_s1 }
 0x21f   :  { %629 = vrsqrt.f32 %v351_v62  ;;  %vm352_vm4 = vcmp.gt.f32.partialorder %v351_v62, 0.0 }
 0x229   :  { %v630_v1 = vpop.eup %629 }
 0x22a   :  { %v354_v3 = vsel %vm352_vm4, %v630_v1, 0.0 }
 0x22b   :  { %v355_v4 = vmul.f32 %v354_v3, %v712_v8 }
 0x22d   :  { %v357_v6 = vmul.f32 %v356_v2, %v355_v4 }
 0x22f   :  { %v358_v7 = vsel %vm352_vm4, %v357_v6, %v717_v13 }
 0x230   :  { %v363_v10 = vadd.f32 %v362_v5, %v358_v7 }
 0x232   :  { %v365_v11 = vmul.f32 %v364_v9, %v363_v10  ;;  %v451_v10 = vstv %s440_s29 }
 0x234   :  { %v852_v12 = vadd.f32 %v365_v11, %v822_v24 }
 0x236   :  { %580 = vst [vmem:[%s945_s3 + $0x20] sm:$0xff] %v852_v12  ;;  %v376_v14 = vmul.f32 %v852_v12, %v852_v12  ;;  %v383_v18 = vrot.slane %v852_v12, 4 }
 0x238   :  { %v377_v15 = vrot.slane %v376_v14, 4 }
 0x23a   :  { %v378_v16 = vadd.f32 %v377_v15, %v376_v14 }
 0x23c   :  { %631 = vrsqrt.f32 %v378_v16  ;;  %vm379_vm5 = vcmp.gt.f32.partialorder %v378_v16, 0.0 }
 0x246   :  { %v632_v17 = vpop.eup %631 }
 0x247   :  { %v381_v19 = vsel %vm379_vm5, %v632_v17, 0.0 }
 0x248   :  { %v382_v20 = vmul.f32 %v381_v19, %v712_v8 }
 0x24a   :  { %v384_v21 = vmul.f32 %v383_v18, %v382_v20 }
 0x24c   :  { %v385_v23 = vsel %vm379_vm5, %v384_v21, %v717_v13 }
 0x24d   :  { %v387_v24 = vmul.f32 %v386_v22, %v385_v23 }
 0x24f   :  { %v388_v25 = vadd.f32 %v387_v24, %v852_v12 }
 0x251   :  { %v389_v26 = vmul.f32 %v388_v25, %v388_v25  ;;  %v396_v30 = vrot.slane %v388_v25, 4 }
 0x253   :  { %v390_v27 = vrot.slane %v389_v26, 4 }
 0x255   :  { %v391_v28 = vadd.f32 %v390_v27, %v389_v26 }
 0x257   :  { %633 = vrsqrt.f32 %v391_v28  ;;  %vm392_vm6 = vcmp.gt.f32.partialorder %v391_v28, 0.0 }
 0x261   :  { %v634_v29 = vpop.eup %633 }
 0x262   :  { %v394_v31 = vsel %vm392_vm6, %v634_v29, 0.0 }
 0x263   :  { %v395_v32 = vmul.f32 %v394_v31, %v712_v8 }
 0x265   :  { %v397_v33 = vmul.f32 %v396_v30, %v395_v32 }
 0x267   :  { %v398_v34 = vsel %vm392_vm6, %v397_v33, %v717_v13 }
 0x268   :  { %v399_v35 = vmul.f32 %v398_v34, %v386_v22 }
 0x26a   :  { %v400_v36 = vadd.f32 %v399_v35, %v852_v12 }
 0x26c   :  { %v401_v37 = vmul.f32 %v400_v36, %v400_v36  ;;  %v408_v41 = vrot.slane %v400_v36, 4 }
 0x26e   :  { %v402_v38 = vrot.slane %v401_v37, 4 }
 0x270   :  { %v403_v39 = vadd.f32 %v402_v38, %v401_v37 }
 0x272   :  { %635 = vrsqrt.f32 %v403_v39  ;;  %vm404_vm7 = vcmp.gt.f32.partialorder %v403_v39, 0.0 }
 0x27c   :  { %v636_v40 = vpop.eup %635 }
 0x27d   :  { %v406_v42 = vsel %vm404_vm7, %v636_v40, 0.0 }
 0x27e   :  { %v407_v43 = vmul.f32 %v406_v42, %v712_v8 }
 0x280   :  { %v409_v44 = vmul.f32 %v408_v41, %v407_v43 }
 0x282   :  { %v410_v46 = vsel %vm404_vm7, %v409_v44, %v717_v13 }
 0x283   :  { %v412_v47 = vmul.f32 %v411_v45, %v410_v46  ;;  %v425_v52 = vadd.f32 %v410_v46, %v398_v34  ;;  %v476_v34 = vstv %s894_s28 }
 0x285   :  { %v413_v48 = vadd.f32 %v412_v47, %v852_v12  ;;  %v426_v53 = vmul.f32 2.0, %v425_v52 }
 0x287   :  { %v414_v49 = vmul.f32 %v413_v48, %v413_v48  ;;  %v421_v55 = vrot.slane %v413_v48, 4  ;;  %v427_v58 = vadd.f32 %v426_v53, %v385_v23 }
 0x289   :  { %v415_v50 = vrot.slane %v414_v49, 4 }
 0x28b   :  { %v416_v51 = vadd.f32 %v415_v50, %v414_v49  ;;  %v494_v50 = vstv %s489_s30 }
 0x28d   :  { %637 = vrsqrt.f32 %v416_v51  ;;  %vm417_vm8 = vcmp.gt.f32.partialorder %v416_v51, 0.0 }
 0x297   :  { %v638_v54 = vpop.eup %637 }
 0x298   :  { %v419_v56 = vsel %vm417_vm8, %v638_v54, 0.0 }
 0x299   :  { %v420_v57 = vmul.f32 %v419_v56, %v712_v8 }
 0x29b   :  { %v422_v59 = vmul.f32 %v421_v55, %v420_v57 }
 0x29d   :  { %v423_v60 = vsel %vm417_vm8, %v422_v59, %v717_v13 }
 0x29e   :  { %v428_v62 = vadd.f32 %v427_v58, %v423_v60 }
 0x2a0   :  { %v430_v63 = vmul.f32 %v429_v61, %v428_v62  ;;  %v516_v62 = vstv %s505_s8 }
 0x2a2   :  { %v882_v0 = vadd.f32 %v430_v63, %v852_v12 }
 0x2a4   :  { %583 = vst [vmem:[%s945_s3 + $0x28] sm:$0xff] %v882_v0  ;;  %v441_v1 = vmul.f32 %v882_v0, %v882_v0  ;;  %v448_v5 = vrot.slane %v882_v0, 4 }
 0x2a6   :  { %v442_v2 = vrot.slane %v441_v1, 4 }
 0x2a8   :  { %v443_v3 = vadd.f32 %v442_v2, %v441_v1 }
 0x2aa   :  { %639 = vrsqrt.f32 %v443_v3  ;;  %vm444_vm9 = vcmp.gt.f32.partialorder %v443_v3, 0.0 }
 0x2b4   :  { %v640_v4 = vpop.eup %639 }
 0x2b5   :  { %v446_v6 = vsel %vm444_vm9, %v640_v4, 0.0 }
 0x2b6   :  { %v447_v7 = vmul.f32 %v446_v6, %v712_v8 }
 0x2b8   :  { %v449_v9 = vmul.f32 %v448_v5, %v447_v7 }
 0x2ba   :  { %v450_v11 = vsel %vm444_vm9, %v449_v9, %v717_v13 }
 0x2bb   :  { %v452_v12 = vmul.f32 %v451_v10, %v450_v11 }
 0x2bd   :  { %v453_v14 = vadd.f32 %v452_v12, %v882_v0 }
 0x2bf   :  { %v454_v15 = vmul.f32 %v453_v14, %v453_v14  ;;  %v461_v19 = vrot.slane %v453_v14, 4 }
 0x2c1   :  { %v455_v16 = vrot.slane %v454_v15, 4 }
 0x2c3   :  { %v456_v17 = vadd.f32 %v455_v16, %v454_v15 }
 0x2c5   :  { %641 = vrsqrt.f32 %v456_v17  ;;  %vm457_vm10 = vcmp.gt.f32.partialorder %v456_v17, 0.0 }
 0x2cf   :  { %v642_v18 = vpop.eup %641 }
 0x2d0   :  { %v459_v20 = vsel %vm457_vm10, %v642_v18, 0.0 }
 0x2d1   :  { %v460_v21 = vmul.f32 %v459_v20, %v712_v8 }
 0x2d3   :  { %v462_v22 = vmul.f32 %v461_v19, %v460_v21 }
 0x2d5   :  { %v463_v23 = vsel %vm457_vm10, %v462_v22, %v717_v13 }
 0x2d6   :  { %v464_v24 = vmul.f32 %v463_v23, %v451_v10 }
 0x2d8   :  { %v465_v25 = vadd.f32 %v464_v24, %v882_v0 }
 0x2da   :  { %v466_v26 = vmul.f32 %v465_v25, %v465_v25  ;;  %v473_v30 = vrot.slane %v465_v25, 4 }
 0x2dc   :  { %v467_v27 = vrot.slane %v466_v26, 4 }
 0x2de   :  { %v468_v28 = vadd.f32 %v467_v27, %v466_v26 }
 0x2e0   :  { %643 = vrsqrt.f32 %v468_v28  ;;  %vm469_vm11 = vcmp.gt.f32.partialorder %v468_v28, 0.0 }
 0x2ea   :  { %v644_v29 = vpop.eup %643 }
 0x2eb   :  { %v471_v31 = vsel %vm469_vm11, %v644_v29, 0.0 }
 0x2ec   :  { %v472_v32 = vmul.f32 %v471_v31, %v712_v8 }
 0x2ee   :  { %v474_v33 = vmul.f32 %v473_v30, %v472_v32 }
 0x2f0   :  { %v475_v35 = vsel %vm469_vm11, %v474_v33, %v717_v13 }
 0x2f1   :  { %v477_v36 = vmul.f32 %v476_v34, %v475_v35  ;;  %v490_v41 = vadd.f32 %v475_v35, %v463_v23  ;;  %v541_v23 = vstv %s921_s7 }
 0x2f3   :  { %v478_v37 = vadd.f32 %v477_v36, %v882_v0  ;;  %v491_v42 = vmul.f32 2.0, %v490_v41 }
 0x2f5   :  { %v479_v38 = vmul.f32 %v478_v37, %v478_v37  ;;  %v486_v44 = vrot.slane %v478_v37, 4  ;;  %v492_v47 = vadd.f32 %v491_v42, %v450_v11 }
 0x2f7   :  { %v480_v39 = vrot.slane %v479_v38, 4 }
 0x2f9   :  { %v481_v40 = vadd.f32 %v480_v39, %v479_v38  ;;  %v559_v39 = vstv %s554_s9 }
 0x2fb   :  { %645 = vrsqrt.f32 %v481_v40  ;;  %vm482_vm12 = vcmp.gt.f32.partialorder %v481_v40, 0.0 }
 0x305   :  { %v646_v43 = vpop.eup %645 }
 0x306   :  { %v484_v45 = vsel %vm482_vm12, %v646_v43, 0.0 }
 0x307   :  { %v485_v46 = vmul.f32 %v484_v45, %v712_v8 }
 0x309   :  { %v487_v48 = vmul.f32 %v486_v44, %v485_v46 }
 0x30b   :  { %v488_v49 = vsel %vm482_vm12, %v487_v48, %v717_v13 }
 0x30c   :  { %v493_v51 = vadd.f32 %v492_v47, %v488_v49 }
 0x30e   :  { %v495_v52 = vmul.f32 %v494_v50, %v493_v51 }
 0x310   :  { %v912_v53 = vadd.f32 %v495_v52, %v882_v0 }
 0x312   :  { %586 = vst [vmem:[%s945_s3 + $0x30] sm:$0xff] %v912_v53  ;;  %v506_v54 = vmul.f32 %v912_v53, %v912_v53  ;;  %v513_v58 = vrot.slane %v912_v53, 4 }
 0x314   :  { %v507_v55 = vrot.slane %v506_v54, 4 }
 0x316   :  { %v508_v56 = vadd.f32 %v507_v55, %v506_v54 }
 0x318   :  { %647 = vrsqrt.f32 %v508_v56  ;;  %vm509_vm13 = vcmp.gt.f32.partialorder %v508_v56, 0.0 }
 0x322   :  { %v648_v57 = vpop.eup %647 }
 0x323   :  { %v511_v59 = vsel %vm509_vm13, %v648_v57, 0.0 }
 0x324   :  { %v512_v60 = vmul.f32 %v511_v59, %v712_v8 }
 0x326   :  { %v514_v61 = vmul.f32 %v513_v58, %v512_v60 }
 0x328   :  { %v515_v63 = vsel %vm509_vm13, %v514_v61, %v717_v13 }
 0x329   :  { %v517_v0 = vmul.f32 %v516_v62, %v515_v63 }
 0x32b   :  { %v518_v1 = vadd.f32 %v517_v0, %v912_v53 }
 0x32d   :  { %v519_v2 = vmul.f32 %v518_v1, %v518_v1  ;;  %v526_v6 = vrot.slane %v518_v1, 4 }
 0x32f   :  { %v520_v3 = vrot.slane %v519_v2, 4 }
 0x331   :  { %v521_v4 = vadd.f32 %v520_v3, %v519_v2 }
 0x333   :  { %649 = vrsqrt.f32 %v521_v4  ;;  %vm522_vm14 = vcmp.gt.f32.partialorder %v521_v4, 0.0 }
 0x33d   :  { %v650_v5 = vpop.eup %649 }
 0x33e   :  { %v524_v7 = vsel %vm522_vm14, %v650_v5, 0.0 }
 0x33f   :  { %v525_v9 = vmul.f32 %v524_v7, %v712_v8 }
 0x341   :  { %v527_v10 = vmul.f32 %v526_v6, %v525_v9 }
 0x343   :  { %v528_v11 = vsel %vm522_vm14, %v527_v10, %v717_v13 }
 0x344   :  { %v529_v12 = vmul.f32 %v528_v11, %v516_v62 }
 0x346   :  { %v530_v14 = vadd.f32 %v529_v12, %v912_v53 }
 0x348   :  { %v531_v15 = vmul.f32 %v530_v14, %v530_v14  ;;  %v538_v19 = vrot.slane %v530_v14, 4 }
 0x34a   :  { %v532_v16 = vrot.slane %v531_v15, 4 }
 0x34c   :  { %v533_v17 = vadd.f32 %v532_v16, %v531_v15 }
 0x34e   :  { %651 = vrsqrt.f32 %v533_v17  ;;  %vm534_vm15 = vcmp.gt.f32.partialorder %v533_v17, 0.0 }
 0x358   :  { %v652_v18 = vpop.eup %651 }
 0x359   :  { %v536_v20 = vsel %vm534_vm15, %v652_v18, 0.0 }
 0x35a   :  { %v537_v21 = vmul.f32 %v536_v20, %v712_v8 }
 0x35c   :  { %v539_v22 = vmul.f32 %v538_v19, %v537_v21 }
 0x35e   :  { %v540_v24 = vsel %vm534_vm15, %v539_v22, %v717_v13 }
 0x35f   :  { %v542_v25 = vmul.f32 %v541_v23, %v540_v24  ;;  %v555_v30 = vadd.f32 %v540_v24, %v528_v11 }
 0x361   :  { %v543_v26 = vadd.f32 %v542_v25, %v912_v53  ;;  %v556_v31 = vmul.f32 2.0, %v555_v30 }
 0x363   :  { %v544_v27 = vmul.f32 %v543_v26, %v543_v26  ;;  %v551_v33 = vrot.slane %v543_v26, 4  ;;  %v557_v36 = vadd.f32 %v556_v31, %v515_v63 }
 0x365   :  { %v545_v28 = vrot.slane %v544_v27, 4 }
 0x367   :  { %v546_v29 = vadd.f32 %v545_v28, %v544_v27 }
 0x369   :  { %653 = vrsqrt.f32 %v546_v29  ;;  %vm547_vm0 = vcmp.gt.f32.partialorder %v546_v29, 0.0 }
 0x373   :  { %v654_v32 = vpop.eup %653 }
 0x374   :  { %v549_v34 = vsel %vm547_vm0, %v654_v32, 0.0 }
 0x375   :  { %v550_v35 = vmul.f32 %v549_v34, %v712_v8 }
 0x377   :  { %v552_v37 = vmul.f32 %v551_v33, %v550_v35 }
 0x379   :  { %v553_v38 = vsel %vm547_vm0, %v552_v37, %v717_v13 }
 0x37a   :  { %v558_v40 = vadd.f32 %v557_v36, %v553_v38 }
 0x37c   :  { %v560_v41 = vmul.f32 %v559_v39, %v558_v40 }
 0x37e   :  { %v561_v42 = vadd.f32 %v560_v41, %v912_v53 }
 0x380   :  { %589 = vst [vmem:[%s945_s3 + $0x38] sm:$0xff] %v561_v42 }
 0x381   :  { %569 = vsyncpa [#allocation5], 1 }

</bundles_post_ra>
